<compile_context>
chip_gen: v7x
topology: tpu7x:2x2x1
jax: 0.10.0
libtpu: 0.0.40
codegen_flags: <defaults>
</compile_context>

<pallas_src>
import functools

import jax
import jax.numpy as jnp
from jax.experimental import pallas as pl
from jax.experimental.pallas import tpu as pltpu

ENVMAX = [1, 4]
OVERLAY_CNT = 1
IN_FEA = 490
H1 = 1024
HDIM = 128

PAD_K = 512          # 490 features + 1 bias feature + 21 zeros -> 4x128 lanes
BIAS_COL = IN_FEA    # x[:, 490] == 1.0 ; w1_k[490, :] == b1  (b1 folded)
PAD_OUT = 128        # 4 / 1 -> 128 output lanes: unmasked vst
TB_MAX = 256         # fills the 256-row MXU on v6e/v7x
SUB = 16             # bf16 sublane packing -> 16-aligned batch tiles
VMEM_LIMIT = 64 * 1024 * 1024


def _round_up(n, m):
    return ((n + m - 1) // m) * m


def _cdiv(a, b):
    return (a + b - 1) // b


def _choose_batch_tiling(batch):
    """Pad batch and pick the batch tile.

    B <= TB_MAX: one grid step (weight-DMA-bound small-B regime).
    B  > TB_MAX: >= 2 near-equal 16-aligned tiles so the parallel grid axis
    can be sharded across v7x's two TensorCores.
    """
    if batch <= TB_MAX:
        b_pad = max(SUB, _round_up(batch, SUB))
        return b_pad, b_pad
    n_steps = _cdiv(batch, TB_MAX)
    tb = _round_up(_cdiv(batch, n_steps), SUB)
    return tb * n_steps, tb


# ---------------------------------------------------------------------------
# Kernels
# ---------------------------------------------------------------------------

def _mlp3_kernel(x_ref, w1_ref, w2_ref, b2_ref, w3_ref, b3_ref, o_ref):
    """One batch tile of a single 3-layer MLP head.

    x tile: (tb, 512) bf16, with the constant 1.0 bias feature at col 490.
    Weights bf16, MXU accumulates in f32, activations kept in bf16.
    """
    x = x_ref[...]
    h1 = jnp.tanh(
        jnp.dot(x, w1_ref[...], preferred_element_type=jnp.float32)
        .astype(jnp.bfloat16))                                    # b1 folded into w1
    h2 = jnp.tanh(
        (jnp.dot(h1, w2_ref[...], preferred_element_type=jnp.float32)
         + b2_ref[...]).astype(jnp.bfloat16))
    out = jnp.dot(h2, w3_ref[...], preferred_element_type=jnp.float32) + b3_ref[...]
    o_ref[...] = out.astype(o_ref.dtype)


def _mlp3_fused_kernel(x_ref, w1_ref,
                       w2a_ref, b2a_ref, w3a_ref, b3a_ref,
                       w2b_ref, b2b_ref, w3b_ref, b3b_ref,
                       oa_ref, ob_ref):
    """Both heads (policy + value) from one x DMA / one layer-1 matmul (N=2048)."""
    x = x_ref[...]
    h1 = jnp.tanh(
        jnp.dot(x, w1_ref[...], preferred_element_type=jnp.float32)
        .astype(jnp.bfloat16))

    def head(h, w2_ref, b2_ref, w3_ref, b3_ref):
        h2 = jnp.tanh(
            (jnp.dot(h, w2_ref[...], preferred_element_type=jnp.float32)
             + b2_ref[...]).astype(jnp.bfloat16))
        return (jnp.dot(h2, w3_ref[...], preferred_element_type=jnp.float32)
                + b3_ref[...])

    oa_ref[...] = head(h1[:, :H1], w2a_ref, b2a_ref, w3a_ref, b3a_ref).astype(oa_ref.dtype)
    ob_ref[...] = head(h1[:, H1:], w2b_ref, b2b_ref, w3b_ref, b3b_ref).astype(ob_ref.dtype)


# ---------------------------------------------------------------------------
# pallas_call wrappers
# ---------------------------------------------------------------------------

def _resident(shape):
    """Weights/biases: same block every grid step -> single-buffered."""
    return pl.BlockSpec(shape, lambda i: (0, 0),
                        pipeline_mode=pl.Buffered(buffer_count=1))


def mlp3_pallas(x_pad, head_params, tb):
    w1, w2, b2, w3, b3 = head_params
    b_pad = x_pad.shape[0]
    return pl.pallas_call(
        _mlp3_kernel,
        out_shape=jax.ShapeDtypeStruct((b_pad, PAD_OUT), jnp.float32),
        grid=(b_pad // tb,),
        in_specs=[
            pl.BlockSpec((tb, PAD_K), lambda i: (i, 0)),    # x (batch-tiled, bf16)
            _resident((PAD_K, H1)),                         # w1 bf16 (b1 folded)
            _resident((H1, HDIM)),                          # w2 bf16
            _resident((1, HDIM)),                           # b2 f32
            _resident((HDIM, PAD_OUT)),                     # w3 bf16 (padded)
            _resident((1, PAD_OUT)),                        # b3 f32 (padded)
        ],
        out_specs=pl.BlockSpec((tb, PAD_OUT), lambda i: (i, 0)),
        compiler_params=pltpu.CompilerParams(
            dimension_semantics=("parallel",),              # megacore on v7x
            vmem_limit_bytes=VMEM_LIMIT),
    )(x_pad, w1, w2, b2, w3, b3)


def mlp3_fused_pallas(x_pad, fused_params, tb):
    (w1c, w2a, b2a, w3a, b3a, w2b, b2b, w3b, b3b) = fused_params
    b_pad = x_pad.shape[0]
    out_sds = jax.ShapeDtypeStruct((b_pad, PAD_OUT), jnp.float32)
    return pl.pallas_call(
        _mlp3_fused_kernel,
        out_shape=(out_sds, out_sds),
        grid=(b_pad // tb,),
        in_specs=[
            pl.BlockSpec((tb, PAD_K), lambda i: (i, 0)),    # x (batch-tiled, bf16)
            _resident((PAD_K, 2 * H1)),                     # [w1_fc1 | w1_fc2] bf16
            _resident((H1, HDIM)), _resident((1, HDIM)),    # fc1 layer 2
            _resident((HDIM, PAD_OUT)), _resident((1, PAD_OUT)),   # fc1 layer 3
            _resident((H1, HDIM)), _resident((1, HDIM)),    # fc2 layer 2
            _resident((HDIM, PAD_OUT)), _resident((1, PAD_OUT)),   # fc2 layer 3
        ],
        out_specs=(pl.BlockSpec((tb, PAD_OUT), lambda i: (i, 0)),
                   pl.BlockSpec((tb, PAD_OUT), lambda i: (i, 0))),
        compiler_params=pltpu.CompilerParams(
            dimension_semantics=("parallel",),
            vmem_limit_bytes=VMEM_LIMIT),
    )(x_pad, w1c, w2a, b2a, w3a, b3a, w2b, b2b, w3b, b3b)


# ---------------------------------------------------------------------------
# Parameters
# ---------------------------------------------------------------------------

def _init_head(key, out_dim):
    """One 3-layer MLP head.  Returns (padded bf16 kernel params, true f32 ref)."""
    k1, k2, k3 = jax.random.split(key, 3)
    w1 = 0.01 * jax.random.normal(k1, (IN_FEA, H1), jnp.float32)
    b1 = jnp.full((1, H1), 0.1, jnp.float32)
    w2 = 0.01 * jax.random.normal(k2, (H1, HDIM), jnp.float32)
    b2 = jnp.full((1, HDIM), 0.1, jnp.float32)
    w3 = 0.01 * jax.random.normal(k3, (HDIM, out_dim), jnp.float32)
    b3 = jnp.full((1, out_dim), 0.1, jnp.float32)

    # Kernel layout: bf16 weights; K padded 490 -> 512 with b1 folded into the
    # bias row; output lanes padded out_dim -> 128.
    w1_k = jnp.zeros((PAD_K, H1), jnp.bfloat16)
    w1_k = w1_k.at[:IN_FEA, :].set(w1.astype(jnp.bfloat16))
    w1_k = w1_k.at[BIAS_COL, :].set(b1[0].astype(jnp.bfloat16))
    w2_k = w2.astype(jnp.bfloat16)
    w3_k = jnp.pad(w3, ((0, 0), (0, PAD_OUT - out_dim))).astype(jnp.bfloat16)
    b3_k = jnp.pad(b3, ((0, 0), (0, PAD_OUT - out_dim)))

    kernel_params = (w1_k, w2_k, b2, w3_k, b3_k)
    ref_params = (w1, b1, w2, b2, w3, b3)        # true f32 (pre-quantization)
    return kernel_params, ref_params


def init_net_params(key):
    k_fc1, k_fc2, k_conv = jax.random.split(key, 3)
    fc1_k, fc1_r = _init_head(k_fc1, ENVMAX[1])   # policy head: 4 logits
    fc2_k, fc2_r = _init_head(k_fc2, 1)           # value head:  1 output

    # Fused layer-1 weights: concat along N so one (tb,512)x(512,2048) matmul
    # feeds both heads.
    w1_cat = jnp.concatenate([fc1_k[0], fc2_k[0]], axis=1)
    fused_k = (w1_cat,
               fc1_k[1], fc1_k[2], fc1_k[3], fc1_k[4],
               fc2_k[1], fc2_k[2], fc2_k[3], fc2_k[4])

    # nn.Conv2d(OVERLAY_CNT, 1, (1,1)) exists in __init__ but is unused in forward().
    conv_w = 0.01 * jax.random.normal(k_conv, (1, 1, 1, 1), jnp.float32)
    conv_b = jnp.zeros((1,), jnp.float32)

    return {"heads_kernel": [fc1_k, fc2_k],
            "fused_kernel": fused_k,
            "heads_ref": [fc1_r, fc2_r],
            "conv": (conv_w, conv_b)}


# ---------------------------------------------------------------------------
# Forward wrappers
# ---------------------------------------------------------------------------

def _prepare_input(x, b_pad):
    """Flatten to (B,490) and emit one bf16 (b_pad, 512) slab.

    The pad + cast fuse into one XLA pass under jit (no second f32 copy of x),
    and column 490 carries the constant 1.0 bias feature for the folded b1.
    """
    batch = x.shape[0]
    x2d = x.reshape(batch, -1).astype(jnp.bfloat16)   # x.view(x.size(0), -1)
    assert x2d.shape[1] == IN_FEA, f"expected {IN_FEA} features, got {x2d.shape[1]}"
    x_pad = jnp.zeros((b_pad, PAD_K), jnp.bfloat16)
    x_pad = x_pad.at[:batch, :IN_FEA].set(x2d)
    x_pad = x_pad.at[:, BIAS_COL].set(1.0)
    return x_pad


@functools.partial(jax.jit, static_argnums=(2,))
def net_forward(params, x, k):
    """NET.forward(x, k).  k must be a static Python int: 0 -> fc1, 1 -> fc2."""
    batch = x.shape[0]
    b_pad, tb = _choose_batch_tiling(batch)
    x_pad = _prepare_input(x, b_pad)
    out = mlp3_pallas(x_pad, params["heads_kernel"][k], tb)
    out_dim = ENVMAX[1] if k == 0 else 1
    return out[:batch, :out_dim]


@jax.jit
def net_forward_both(params, x):
    """PPO path: policy and value from a single fused pallas_call."""
    batch = x.shape[0]
    b_pad, tb = _choose_batch_tiling(batch)
    x_pad = _prepare_input(x, b_pad)
    pol, val = mlp3_fused_pallas(x_pad, params["fused_kernel"], tb)
    return pol[:batch, :ENVMAX[1]], val[:batch, :1]


def net_forward_reference(params, x, k):
    """Plain-JAX f32 reference using the true (pre-bf16) weights."""
    w1, b1, w2, b2, w3, b3 = params["heads_ref"][k]
    h = x.reshape(x.shape[0], -1).astype(jnp.float32)
    h = jnp.tanh(h @ w1 + b1)
    h = jnp.tanh(h @ w2 + b2)
    return h @ w3 + b3


# ---------------------------------------------------------------------------
# Self-test
# ---------------------------------------------------------------------------

if __name__ == "__main__":
    key = jax.random.PRNGKey(0)
    k_param, k_input = jax.random.split(key)
    params = init_net_params(k_param)

    # Small deterministic input that flattens to (B, 490): (2, 1, 10, 49).
    x = jax.random.normal(k_input, (2, OVERLAY_CNT, 10, 49), dtype=jnp.float32)

    # Per-head path (forward(x, k) semantics).
    out_policy = jax.block_until_ready(net_forward(params, x, 0))
    out_value = jax.block_until_ready(net_forward(params, x, 1))
    ref_policy = net_forward_reference(params, x, 0)
    ref_value = net_forward_reference(params, x, 1)
    assert out_policy.shape == (2, ENVMAX[1])
    assert out_value.shape == (2, 1)
    assert jnp.allclose(out_policy, ref_policy, atol=1e-2, rtol=1e-2)
    assert jnp.allclose(out_value, ref_value, atol=1e-2, rtol=1e-2)

    # Fused both-heads path (one pallas_call).
    fused_policy, fused_value = jax.block_until_ready(net_forward_both(params, x))
    assert fused_policy.shape == (2, ENVMAX[1])
    assert fused_value.shape == (2, 1)
    assert jnp.allclose(fused_policy, ref_policy, atol=1e-2, rtol=1e-2)
    assert jnp.allclose(fused_value, ref_value, atol=1e-2, rtol=1e-2)

    # Exercise the multi-step batch-tiled grid (B > TB_MAX, non-multiple of tile).
    xb = jax.random.normal(jax.random.PRNGKey(1), (300, OVERLAY_CNT, 10, 49),
                           dtype=jnp.float32)
    out_b = jax.block_until_ready(net_forward(params, xb, 0))
    ref_b = net_forward_reference(params, xb, 0)
    assert out_b.shape == (300, ENVMAX[1])
    assert jnp.allclose(out_b, ref_b, atol=1e-2, rtol=1e-2)

    print("KERNEL_OK")
</pallas_src>

<mosaic_0001>
module attributes {stable_mosaic.version = 11 : i64} {
  func.func @_mlp3_kernel(%arg0: i32, %arg1: memref<16x512xbf16, #tpu.memory_space<vmem>>, %arg2: memref<512x1024xbf16, #tpu.memory_space<vmem>>, %arg3: memref<1024x128xbf16, #tpu.memory_space<vmem>>, %arg4: memref<1x128xf32, #tpu.memory_space<vmem>>, %arg5: memref<128x128xbf16, #tpu.memory_space<vmem>>, %arg6: memref<1x128xf32, #tpu.memory_space<vmem>>, %arg7: memref<16x128xf32, #tpu.memory_space<vmem>>) attributes {dimension_semantics = [#tpu.dimension_semantics<parallel>], iteration_bounds = array<i64: 1>, scalar_prefetch = 0 : i64, scratch_operands = 0 : i64, tpu.core_type = #tpu.core_type<tc>, window_params = [{transform_indices = @transform_0, window_bounds = array<i64: 16, 512>}, {pipeline_mode = #tpu.pipeline_mode<synchronous>, transform_indices = @transform_1, window_bounds = array<i64: 512, 1024>}, {pipeline_mode = #tpu.pipeline_mode<synchronous>, transform_indices = @transform_2, window_bounds = array<i64: 1024, 128>}, {pipeline_mode = #tpu.pipeline_mode<synchronous>, transform_indices = @transform_3, window_bounds = array<i64: 1, 128>}, {pipeline_mode = #tpu.pipeline_mode<synchronous>, transform_indices = @transform_4, window_bounds = array<i64: 128, 128>}, {pipeline_mode = #tpu.pipeline_mode<synchronous>, transform_indices = @transform_5, window_bounds = array<i64: 1, 128>}, {transform_indices = @transform_6, window_bounds = array<i64: 16, 128>}]} {
    %c0 = arith.constant 0 : index
    %c0_0 = arith.constant 0 : index
    %0 = vector.load %arg1[%c0, %c0_0] : memref<16x512xbf16, #tpu.memory_space<vmem>>, vector<16x512xbf16>
    %c0_1 = arith.constant 0 : index
    %c0_2 = arith.constant 0 : index
    %1 = vector.load %arg2[%c0_1, %c0_2] : memref<512x1024xbf16, #tpu.memory_space<vmem>>, vector<512x1024xbf16>
    %cst = arith.constant dense<0.000000e+00> : vector<16x1024xf32>
    %2 = tpu.matmul %0, %1, %cst {dimension_numbers = #tpu.dot_dimension_numbers<[1], [0], [0], [1], [0, 0, 1, 1], [], []>} : vector<16x512xbf16>, vector<512x1024xbf16>, vector<16x1024xf32> -> vector<16x1024xf32>
    %3 = arith.truncf %2 : vector<16x1024xf32> to vector<16x1024xbf16>
    %4 = math.tanh %3 : vector<16x1024xbf16>
    %c0_3 = arith.constant 0 : index
    %c0_4 = arith.constant 0 : index
    %5 = vector.load %arg3[%c0_3, %c0_4] : memref<1024x128xbf16, #tpu.memory_space<vmem>>, vector<1024x128xbf16>
    %cst_5 = arith.constant dense<0.000000e+00> : vector<16x128xf32>
    %6 = tpu.matmul %4, %5, %cst_5 {dimension_numbers = #tpu.dot_dimension_numbers<[1], [0], [0], [1], [0, 0, 1, 1], [], []>} : vector<16x1024xbf16>, vector<1024x128xbf16>, vector<16x128xf32> -> vector<16x128xf32>
    %c0_6 = arith.constant 0 : index
    %c0_7 = arith.constant 0 : index
    %7 = vector.load %arg4[%c0_6, %c0_7] : memref<1x128xf32, #tpu.memory_space<vmem>>, vector<1x128xf32>
    %8 = vector.broadcast %7 : vector<1x128xf32> to vector<16x128xf32>
    %9 = arith.addf %6, %8 : vector<16x128xf32>
    %10 = arith.truncf %9 : vector<16x128xf32> to vector<16x128xbf16>
    %11 = math.tanh %10 : vector<16x128xbf16>
    %c0_8 = arith.constant 0 : index
    %c0_9 = arith.constant 0 : index
    %12 = vector.load %arg5[%c0_8, %c0_9] : memref<128x128xbf16, #tpu.memory_space<vmem>>, vector<128x128xbf16>
    %cst_10 = arith.constant dense<0.000000e+00> : vector<16x128xf32>
    %13 = tpu.matmul %11, %12, %cst_10 {dimension_numbers = #tpu.dot_dimension_numbers<[1], [0], [0], [1], [0, 0, 1, 1], [], []>} : vector<16x128xbf16>, vector<128x128xbf16>, vector<16x128xf32> -> vector<16x128xf32>
    %c0_11 = arith.constant 0 : index
    %c0_12 = arith.constant 0 : index
    %14 = vector.load %arg6[%c0_11, %c0_12] : memref<1x128xf32, #tpu.memory_space<vmem>>, vector<1x128xf32>
    %15 = vector.broadcast %14 : vector<1x128xf32> to vector<16x128xf32>
    %16 = arith.addf %13, %15 : vector<16x128xf32>
    %c0_13 = arith.constant 0 : index
    %c0_14 = arith.constant 0 : index
    %17 = vector.load %arg7[%c0_13, %c0_14] : memref<16x128xf32, #tpu.memory_space<vmem>>, vector<16x128xf32>
    tpu.vector_store %arg7[%c0_13, %c0_14], %16 {strides = array<i32>} : memref<16x128xf32, #tpu.memory_space<vmem>>, vector<16x128xf32>,
    return
  }
  func.func @transform_0(%arg0: i32) -> (i32, i32) {
    %c0_i32 = arith.constant 0 : i32
    %c0_i32_0 = arith.constant 0 : i32
    return %arg0, %c0_i32 : i32, i32
  }
  func.func @transform_1(%arg0: i32) -> (i32, i32) {
    %c0_i32 = arith.constant 0 : i32
    %c0_i32_0 = arith.constant 0 : i32
    %c0_i32_1 = arith.constant 0 : i32
    return %c0_i32, %c0_i32_0 : i32, i32
  }
  func.func @transform_2(%arg0: i32) -> (i32, i32) {
    %c0_i32 = arith.constant 0 : i32
    %c0_i32_0 = arith.constant 0 : i32
    %c0_i32_1 = arith.constant 0 : i32
    return %c0_i32, %c0_i32_0 : i32, i32
  }
  func.func @transform_3(%arg0: i32) -> (i32, i32) {
    %c0_i32 = arith.constant 0 : i32
    %c0_i32_0 = arith.constant 0 : i32
    %c0_i32_1 = arith.constant 0 : i32
    return %c0_i32, %c0_i32_0 : i32, i32
  }
  func.func @transform_4(%arg0: i32) -> (i32, i32) {
    %c0_i32 = arith.constant 0 : i32
    %c0_i32_0 = arith.constant 0 : i32
    %c0_i32_1 = arith.constant 0 : i32
    return %c0_i32, %c0_i32_0 : i32, i32
  }
  func.func @transform_5(%arg0: i32) -> (i32, i32) {
    %c0_i32 = arith.constant 0 : i32
    %c0_i32_0 = arith.constant 0 : i32
    %c0_i32_1 = arith.constant 0 : i32
    return %c0_i32, %c0_i32_0 : i32, i32
  }
  func.func @transform_6(%arg0: i32) -> (i32, i32) {
    %c0_i32 = arith.constant 0 : i32
    %c0_i32_0 = arith.constant 0 : i32
    return %arg0, %c0_i32 : i32, i32
  }
}

</mosaic_0001>

<bundles_post_ra>
// kernel: net_forward.1
= control target key start
LH: loop header
LB: loop body
LE: loop exit
PB: predicated region body
PF: predicated region fallthrough
CT: control target
= control target key end

     0   :  { %11 = vsyncpa [#allocation3], 0  ;;  %s3745_s0 = inlined_call_operand.hbm [shape: bf16[16,512], index: 0, kind: input, shape index: {}]   ;;  %s3746_s1 = inlined_call_operand.hbm [shape: bf16[512,1024], index: 1, kind: input, shape index: {}]   ;;  %s3747_s2 = inlined_call_operand.hbm [shape: bf16[1024,128], index: 2, kind: input, shape index: {}]   ;;  %s3748_s3 = inlined_call_operand.hbm [shape: f32[1,128], index: 3, kind: input, shape index: {}]   ;;  %s3749_s4 = inlined_call_operand.hbm [shape: bf16[128,128], index: 4, kind: input, shape index: {}]   ;;  %s3750_s5 = inlined_call_operand.hbm [shape: f32[1,128], index: 5, kind: input, shape index: {}]   ;;  %s3751_s6 = inlined_call_operand.hbm [shape: f32[16,128], index: 6, kind: output, shape index: {}]  }
   0x1   :  { %12 = vsyncpa [#allocation6], 0 }
   0x2   :  { %13 = vsyncpa [#allocation9], 0 }
   0x3   :  { %14 = vsyncpa [#allocation12], 0 }
   0x4   :  { %15 = vsyncpa [#allocation4], 0  ;;  %s3588_s21 = smov [#allocation5]   ;;  %s3424_s25 = scalar_lea.hbm %s3746_s1, 32768 }
   0x5   :  { %s33_s22 = sshll.u32 %s3588_s21, 4  ;;  %p3425_p0 = scmp.ne.s32.totalorder %s3746_s1, %s3424_s25  ;;  %s34_s22 = int_to_ptr.vmem [resolvable:$true] %s33_s22 }
   0x6   :  { %p3428_p1 = scmp.lt.u32.totalorder %s3424_s25, %s3746_s1 }
   0x8   :  { %p3430_p2 = pnand %p3428_p1, %p3425_p0 }
   0xa   :  { %3433 = shalt.err (!%p3430_p2)
}
   0xb   :  { %s3434_s30 = scalar_lea.vmem %s34_s22, 32768  ;;  %p3439_p4 = scmp.lt.s32.totalorder %s34_s22, %s34_s22 }
   0xc   :  { %p3435_p3 = scmp.ne.s32.totalorder %s34_s22, %s3434_s30  ;;  %p3440_p5 = scmp.lt.s32.totalorder %s3434_s30, %s3434_s30 }
   0xe   :  { %p3441_p6 = por %p3440_p5, %p3439_p4 }
  0x10   :  { %p3442_p7 = pnand %p3441_p6, %p3435_p3 }
  0x12   :  { %3445 = shalt.err (!%p3442_p7)
}
  0x13   :  { %s3589_s7 = smov 512   ;;  %s3590_s8 = smov 32  }
  0x14   :  { %39 = dma.hbm_to_vmem [thread:$0]  %s3746_s1, 32768, %s34_s22, [#allocation6], %s3589_s7, %s3589_s7, %s3590_s8  }
  0x15   :  { %s3591_s11 = smov [#allocation8]   ;;  %s3592_s13 = smov [#allocation2]  }
  0x16   :  { %s58_s12 = sshll.u32 %s3591_s11, 4  ;;  %s21_s14 = sshll.u32 %s3592_s13, 4  ;;  %s59_s12 = int_to_ptr.vmem [resolvable:$true] %s58_s12  ;;  %s22_s14 = int_to_ptr.vmem [resolvable:$true] %s21_s14 }
  0x17   :  { %s3446_s17 = scalar_lea.hbm %s3748_s3, 16 }
  0x18   :  { %p3447_p8 = scmp.ne.s32.totalorder %s3748_s3, %s3446_s17  ;;  %p3450_p9 = scmp.lt.u32.totalorder %s3446_s17, %s3748_s3 }
  0x1a   :  { %p3452_p10 = pnand %p3450_p9, %p3447_p8 }
  0x1c   :  { %3455 = shalt.err (!%p3452_p10)
}
  0x1d   :  { %s3456_s1 = scalar_lea.vmem %s59_s12, 16  ;;  %s3460_s22 = scalar_lea.vmem %s59_s12, 32 }
  0x1e   :  { %p3457_p11 = scmp.ne.s32.totalorder %s59_s12, %s3456_s1  ;;  %p3461_p12 = scmp.lt.s32.totalorder %s59_s12, %s59_s12 }
  0x1f   :  { %p3462_p13 = scmp.lt.s32.totalorder %s3460_s22, %s3456_s1 }
  0x21   :  { %p3463_p0 = por %p3462_p13, %p3461_p12 }
  0x23   :  { %p3464_p1 = pnand %p3463_p0, %p3457_p11 }
  0x25   :  { %3467 = shalt.err (!%p3464_p1)
}
  0x26   :  { %61 = dma.hbm_to_vmem [thread:$0]  %s3748_s3, 16, %s59_s12, [#allocation9]  }
  0x27   :  { %s3468_s27 = scalar_lea.hbm %s3745_s0, 512 }
  0x28   :  { %p3469_p2 = scmp.ne.s32.totalorder %s3745_s0, %s3468_s27  ;;  %p3472_p3 = scmp.lt.u32.totalorder %s3468_s27, %s3745_s0 }
  0x2a   :  { %p3474_p4 = pnand %p3472_p3, %p3469_p2 }
  0x2c   :  { %3477 = shalt.err (!%p3474_p4)
}
  0x2d   :  { %s3478_s8 = scalar_lea.vmem %s22_s14, 512  ;;  %p3483_p6 = scmp.lt.s32.totalorder %s22_s14, %s22_s14 }
  0x2e   :  { %p3479_p5 = scmp.ne.s32.totalorder %s22_s14, %s3478_s8  ;;  %p3484_p7 = scmp.lt.s32.totalorder %s3478_s8, %s3478_s8 }
  0x30   :  { %p3485_p8 = por %p3484_p7, %p3483_p6 }
  0x32   :  { %p3486_p9 = pnand %p3485_p8, %p3479_p5 }
  0x34   :  { %3489 = shalt.err (!%p3486_p9)
}
  0x35   :  { %s3593_s3 = smov 256   ;;  %s3594_s9 = smov 16  }
  0x36   :  { %27 = dma.hbm_to_vmem [thread:$0]  %s3745_s0, 512, %s22_s14, [#allocation3], %s3593_s3, %s3593_s3, %s3594_s9  }
  0x37   :  { %s3595_s12 = smov [#allocation7]   ;;  %s3490_s17 = scalar_lea.hbm %s3747_s2, 8192 }
  0x38   :  { %s45_s13 = sshll.u32 %s3595_s12, 4  ;;  %p3491_p10 = scmp.ne.s32.totalorder %s3747_s2, %s3490_s17  ;;  %s46_s13 = int_to_ptr.vmem [resolvable:$true] %s45_s13 }
  0x39   :  { %p3494_p11 = scmp.lt.u32.totalorder %s3490_s17, %s3747_s2 }
  0x3b   :  { %p3496_p12 = pnand %p3494_p11, %p3491_p10 }
  0x3d   :  { %3499 = shalt.err (!%p3496_p12)
}
  0x3e   :  { %s3500_s1 = scalar_lea.vmem %s46_s13, 8192  ;;  %p3505_p0 = scmp.lt.s32.totalorder %s46_s13, %s46_s13 }
  0x3f   :  { %p3501_p13 = scmp.ne.s32.totalorder %s46_s13, %s3500_s1  ;;  %p3506_p1 = scmp.lt.s32.totalorder %s3500_s1, %s3500_s1 }
  0x41   :  { %p3507_p2 = por %p3506_p1, %p3505_p0 }
  0x43   :  { %p3508_p3 = pnand %p3507_p2, %p3501_p13 }
  0x45   :  { %3511 = shalt.err (!%p3508_p3)
}
  0x46   :  { %s3596_s0 = smov 64   ;;  %s3597_s14 = smov 4  }
  0x47   :  { %51 = dma.hbm_to_vmem [thread:$0]  %s3747_s2, 8192, %s46_s13, [#allocation6], %s3596_s0, %s3596_s0, %s3597_s14  }
  0x48   :  { %s3598_s24 = smov [#allocation10]   ;;  %s3599_s26 = smov [#allocation11]  }
  0x49   :  { %s67_s25 = sshll.u32 %s3598_s24, 4  ;;  %s80_s27 = sshll.u32 %s3599_s26, 4  ;;  %s68_s25 = int_to_ptr.vmem [resolvable:$true] %s67_s25  ;;  %s81_s27 = int_to_ptr.vmem [resolvable:$true] %s80_s27 }
  0x4a   :  { %s3512_s30 = scalar_lea.hbm %s3749_s4, 1024 }
  0x4b   :  { %p3513_p4 = scmp.ne.s32.totalorder %s3749_s4, %s3512_s30  ;;  %p3516_p5 = scmp.lt.u32.totalorder %s3512_s30, %s3749_s4 }
  0x4d   :  { %p3518_p6 = pnand %p3516_p5, %p3513_p4 }
  0x4f   :  { %3521 = shalt.err (!%p3518_p6)
}
  0x50   :  { %s3522_s2 = scalar_lea.vmem %s68_s25, 1024  ;;  %p3527_p8 = scmp.lt.s32.totalorder %s68_s25, %s68_s25 }
  0x51   :  { %p3523_p7 = scmp.ne.s32.totalorder %s68_s25, %s3522_s2  ;;  %p3528_p9 = scmp.lt.s32.totalorder %s3522_s2, %s3522_s2 }
  0x53   :  { %p3529_p10 = por %p3528_p9, %p3527_p8 }
  0x55   :  { %p3530_p11 = pnand %p3529_p10, %p3523_p7 }
  0x57   :  { %3533 = shalt.err (!%p3530_p11)
}
  0x58   :  { %73 = dma.hbm_to_vmem [thread:$0]  %s3749_s4, 1024, %s68_s25, [#allocation9], %s3596_s0, %s3596_s0, %s3597_s14  }
  0x59   :  { %s3534_s15 = scalar_lea.hbm %s3750_s5, 16 }
  0x5a   :  { %p3535_p12 = scmp.ne.s32.totalorder %s3750_s5, %s3534_s15  ;;  %p3538_p13 = scmp.lt.u32.totalorder %s3534_s15, %s3750_s5 }
  0x5c   :  { %p3540_p0 = pnand %p3538_p13, %p3535_p12 }
  0x5e   :  { %3543 = shalt.err (!%p3540_p0)
}
  0x5f   :  { %s3544_s20 = scalar_lea.vmem %s81_s27, 16  ;;  %s3548_s21 = scalar_lea.vmem %s81_s27, 32 }
  0x60   :  { %p3545_p1 = scmp.ne.s32.totalorder %s81_s27, %s3544_s20  ;;  %p3549_p2 = scmp.lt.s32.totalorder %s81_s27, %s81_s27 }
  0x61   :  { %p3550_p3 = scmp.lt.s32.totalorder %s3548_s21, %s3544_s20 }
  0x63   :  { %p3551_p4 = por %p3550_p3, %p3549_p2 }
  0x65   :  { %p3552_p5 = pnand %p3551_p4, %p3545_p1 }
  0x67   :  { %3555 = shalt.err (!%p3552_p5)
}
  0x68   :  { %83 = dma.hbm_to_vmem [thread:$0]  %s3750_s5, 16, %s81_s27, [#allocation12]  }
  0x69   :  { %3578 = dma.done.wait [#allocation3], 512  }
  0x6a   :  { %3579 = vsyncadd [#allocation3], 4294966784 }
  0x6b   :  { %3580 = dma.done.wait [#allocation6], 40960  }
  0x6c   :  { %3581 = vsyncadd [#allocation6], 4294926336 }
  0x6d   :  { %3582 = dma.done.wait [#allocation9], 1040  }
  0x6e   :  { %3583 = vsyncadd [#allocation9], 4294966256 }
  0x6f   :  { %3584 = dma.done.wait [#allocation12], 16  }
  0x70   :  { %3585 = vsyncadd [#allocation12], 4294967280  ;;  %v107_v0 = vld [vmem:[#allocation5] sm:$0xff]  ;;  %v108_v2 = vld [vmem:[#allocation5 + $0x8] sm:$0xff]  ;;  %vm3601_vm0 = vmmov 0   ;;  %s3602_s5 = smov [#allocation13]  }
  0x71   :  { %v111_v1 = vld [vmem:[#allocation5 + $0x20] sm:$0xff]  ;;  %v112_v4 = vld [vmem:[#allocation5 + $0x28] sm:$0xff]  ;;  %s2827_s0 = sshll.u32 %s3602_s5, 4  ;;  %s2828_s0 = int_to_ptr.vmem [resolvable:$true] %s2827_s0 }
  0x72   :  { %v2847_v3 = vcombine.high %v107_v0, %v111_v1  ;;  %v2846_v5 = vcombine.low %v107_v0, %v111_v1  ;;  %v115_v6 = vld [vmem:[#allocation5 + $0x40] sm:$0xff]  ;;  %v2849_v8 = vcombine.high %v108_v2, %v112_v4  ;;  %v2848_v9 = vcombine.low %v108_v2, %v112_v4  ;;  %v116_v11 = vld [vmem:[#allocation5 + $0x48] sm:$0xff]  ;;  %s3556_s14 = scalar_lea.vmem %s2828_s0, 256  ;;  %p3561_p7 = scmp.lt.s32.totalorder %s2828_s0, %s2828_s0 }
  0x73   :  { %v119_v7 = vld [vmem:[#allocation5 + $0x60] sm:$0xff]  ;;  %v120_v12 = vld [vmem:[#allocation5 + $0x68] sm:$0xff]  ;;  %p3557_p6 = scmp.ne.s32.totalorder %s2828_s0, %s3556_s14  ;;  %p3562_p8 = scmp.lt.s32.totalorder %s3556_s14, %s3556_s14 }
  0x74   :  { %v2855_v10 = vcombine.high %v115_v6, %v119_v7  ;;  %v123_v13 = vld [vmem:[#allocation5 + $0x80] sm:$0xff]  ;;  %1663 = vmatprep.subr.bf16.mxu0 %v2847_v3  ;;  %v2857_v14 = vcombine.high %v116_v11, %v120_v12  ;;  %v124_v16 = vld [vmem:[#allocation5 + $0x88] sm:$0xff]  ;;  %1749 = vmatprep.subr.bf16.mxu1 %v2849_v8  ;;  %v2854_v18 = vcombine.low %v115_v6, %v119_v7 }
  0x75   :  { %v127_v15 = vld [vmem:[#allocation5 + $0xa0] sm:$0xff]  ;;  %v128_v17 = vld [vmem:[#allocation5 + $0xa8] sm:$0xff]  ;;  %1664 = vmatpush1.bf16.msra.mxu0 %v2846_v5  ;;  %1750 = vmatpush1.bf16.msra.mxu1 %v2848_v9  ;;  %v2856_v19 = vcombine.low %v116_v11, %v120_v12  ;;  %p3563_p9 = por %p3562_p8, %p3561_p7 }
  0x76   :  { %1665 = vmatprep.subr.bf16.mxu0 %v2855_v10  ;;  %v2863_v20 = vcombine.high %v123_v13, %v127_v15  ;;  %1751 = vmatprep.subr.bf16.mxu1 %v2857_v14  ;;  %v2865_v21 = vcombine.high %v124_v16, %v128_v17  ;;  %v131_v22 = vld [vmem:[#allocation5 + $0xc0] sm:$0xff]  ;;  %v132_v24 = vld [vmem:[#allocation5 + $0xc8] sm:$0xff]  ;;  %v2862_v26 = vcombine.low %v123_v13, %v127_v15 }
  0x77   :  { %v135_v23 = vld [vmem:[#allocation5 + $0xe0] sm:$0xff]  ;;  %v136_v25 = vld [vmem:[#allocation5 + $0xe8] sm:$0xff]  ;;  %v2864_v27 = vcombine.low %v124_v16, %v128_v17  ;;  %p3564_p10 = pnand %p3563_p9, %p3557_p6 }
  0x78   :  { %v2871_v28 = vcombine.high %v131_v22, %v135_v23  ;;  %v2873_v29 = vcombine.high %v132_v24, %v136_v25  ;;  %v139_v30 = vld [vmem:[#allocation5 + $0x100] sm:$0xff]  ;;  %v140_v32 = vld [vmem:[#allocation5 + $0x108] sm:$0xff]  ;;  %v2870_v34 = vcombine.low %v131_v22, %v135_v23  ;;  %v2872_v35 = vcombine.low %v132_v24, %v136_v25 }
  0x79   :  { %1666 = vmatpush1.bf16.msra.mxu0 %v2854_v18  ;;  %1752 = vmatpush1.bf16.msra.mxu1 %v2856_v19  ;;  %v143_v31 = vld [vmem:[#allocation5 + $0x120] sm:$0xff]  ;;  %v144_v33 = vld [vmem:[#allocation5 + $0x128] sm:$0xff] }
  0x7a   :  { %1667 = vmatprep.subr.bf16.mxu0 %v2863_v20  ;;  %1753 = vmatprep.subr.bf16.mxu1 %v2865_v21  ;;  %v2879_v36 = vcombine.high %v139_v30, %v143_v31  ;;  %v2881_v37 = vcombine.high %v140_v32, %v144_v33  ;;  %v147_v38 = vld [vmem:[#allocation5 + $0x140] sm:$0xff]  ;;  %v148_v40 = vld [vmem:[#allocation5 + $0x148] sm:$0xff]  ;;  %v2878_v42 = vcombine.low %v139_v30, %v143_v31 }
  0x7b   :  { %v151_v39 = vld [vmem:[#allocation5 + $0x160] sm:$0xff]  ;;  %v152_v41 = vld [vmem:[#allocation5 + $0x168] sm:$0xff]  ;;  %v2880_v43 = vcombine.low %v140_v32, %v144_v33 }
  0x7c   :  { %v2887_v44 = vcombine.high %v147_v38, %v151_v39  ;;  %v2889_v45 = vcombine.high %v148_v40, %v152_v41  ;;  %v155_v46 = vld [vmem:[#allocation5 + $0x180] sm:$0xff]  ;;  %v156_v48 = vld [vmem:[#allocation5 + $0x188] sm:$0xff]  ;;  %v2886_v50 = vcombine.low %v147_v38, %v151_v39  ;;  %v2888_v51 = vcombine.low %v148_v40, %v152_v41 }
  0x7d   :  { %1668 = vmatpush1.bf16.msra.mxu0 %v2862_v26  ;;  %1754 = vmatpush1.bf16.msra.mxu1 %v2864_v27  ;;  %v159_v47 = vld [vmem:[#allocation5 + $0x1a0] sm:$0xff]  ;;  %v160_v49 = vld [vmem:[#allocation5 + $0x1a8] sm:$0xff] }
  0x7e   :  { %1669 = vmatprep.subr.bf16.mxu0 %v2871_v28  ;;  %1755 = vmatprep.subr.bf16.mxu1 %v2873_v29  ;;  %v2895_v52 = vcombine.high %v155_v46, %v159_v47  ;;  %v2897_v53 = vcombine.high %v156_v48, %v160_v49  ;;  %v163_v54 = vld [vmem:[#allocation5 + $0x1c0] sm:$0xff]  ;;  %v164_v57 = vld [vmem:[#allocation5 + $0x1c8] sm:$0xff]  ;;  %v2894_v59 = vcombine.low %v155_v46, %v159_v47 }
  0x7f   :  { %v167_v55 = vld [vmem:[#allocation5 + $0x1e0] sm:$0xff]  ;;  %v168_v58 = vld [vmem:[#allocation5 + $0x1e8] sm:$0xff]  ;;  %v2896_v60 = vcombine.low %v156_v48, %v160_v49 }
  0x80   :  { %v3712_v56 = vld [vmem:[#allocation2 + $0x4] ss:$16 sps:$4 sm:$0xff]   ;;  %v2903_v61 = vcombine.high %v163_v54, %v167_v55  ;;  %v2905_v62 = vcombine.high %v164_v57, %v168_v58  ;;  %v172_v1 = vld [vmem:[#allocation5 + $0x208] sm:$0xff]  ;;  %v2902_v3 = vcombine.low %v163_v54, %v167_v55  ;;  %v2904_v4 = vcombine.low %v164_v57, %v168_v58 }
  0x81   :  { %1670 = vmatpush1.bf16.msra.mxu0 %v2870_v34  ;;  %1756 = vmatpush1.bf16.msra.mxu1 %v2872_v35  ;;  %v171_v63 = vld [vmem:[#allocation5 + $0x200] sm:$0xff]  ;;  %v176_v2 = vld [vmem:[#allocation5 + $0x228] sm:$0xff] }
  0x82   :  { %1671 = vmatprep.subr.bf16.mxu0 %v2879_v36  ;;  %1757 = vmatprep.subr.bf16.mxu1 %v2881_v37  ;;  %v175_v0 = vld [vmem:[#allocation5 + $0x220] sm:$0xff]  ;;  %v2913_v6 = vcombine.high %v172_v1, %v176_v2  ;;  %v180_v9 = vld [vmem:[#allocation5 + $0x248] sm:$0xff]  ;;  %v2912_v12 = vcombine.low %v172_v1, %v176_v2 }
  0x83   :  { %1695 = vmatprep.mubr.bf16.mxu0 %v3712_v56  ;;  %1781 = vmatprep.mubr.bf16.mxu1 %v3712_v56  ;;  %v2911_v5 = vcombine.high %v171_v63, %v175_v0  ;;  %v179_v7 = vld [vmem:[#allocation5 + $0x240] sm:$0xff]  ;;  %v184_v10 = vld [vmem:[#allocation5 + $0x268] sm:$0xff]  ;;  %v2910_v11 = vcombine.low %v171_v63, %v175_v0 }
  0x84   :  { %v183_v8 = vld [vmem:[#allocation5 + $0x260] sm:$0xff]  ;;  %v2921_v14 = vcombine.high %v180_v9, %v184_v10  ;;  %v188_v17 = vld [vmem:[#allocation5 + $0x288] sm:$0xff]  ;;  %v2920_v20 = vcombine.low %v180_v9, %v184_v10 }
  0x85   :  { %1672 = vmatpush1.bf16.msra.mxu0 %v2878_v42  ;;  %1758 = vmatpush1.bf16.msra.mxu1 %v2880_v43  ;;  %v2919_v13 = vcombine.high %v179_v7, %v183_v8  ;;  %v187_v15 = vld [vmem:[#allocation5 + $0x280] sm:$0xff]  ;;  %v192_v18 = vld [vmem:[#allocation5 + $0x2a8] sm:$0xff]  ;;  %v2918_v19 = vcombine.low %v179_v7, %v183_v8 }
  0x86   :  { %1673 = vmatprep.subr.bf16.mxu0 %v2887_v44  ;;  %1759 = vmatprep.subr.bf16.mxu1 %v2889_v45  ;;  %v191_v16 = vld [vmem:[#allocation5 + $0x2a0] sm:$0xff]  ;;  %v2929_v22 = vcombine.high %v188_v17, %v192_v18  ;;  %v196_v25 = vld [vmem:[#allocation5 + $0x2c8] sm:$0xff]  ;;  %v2928_v28 = vcombine.low %v188_v17, %v192_v18 }
  0x87   :  { %v2927_v21 = vcombine.high %v187_v15, %v191_v16  ;;  %v195_v23 = vld [vmem:[#allocation5 + $0x2c0] sm:$0xff]  ;;  %v200_v26 = vld [vmem:[#allocation5 + $0x2e8] sm:$0xff]  ;;  %v2926_v27 = vcombine.low %v187_v15, %v191_v16 }
  0x88   :  { %v199_v24 = vld [vmem:[#allocation5 + $0x2e0] sm:$0xff]  ;;  %v2937_v30 = vcombine.high %v196_v25, %v200_v26  ;;  %v204_v33 = vld [vmem:[#allocation5 + $0x308] sm:$0xff]  ;;  %v2936_v36 = vcombine.low %v196_v25, %v200_v26 }
  0x89   :  { %1674 = vmatpush1.bf16.msra.mxu0 %v2886_v50  ;;  %1760 = vmatpush1.bf16.msra.mxu1 %v2888_v51  ;;  %v2935_v29 = vcombine.high %v195_v23, %v199_v24  ;;  %v203_v31 = vld [vmem:[#allocation5 + $0x300] sm:$0xff]  ;;  %v208_v34 = vld [vmem:[#allocation5 + $0x328] sm:$0xff]  ;;  %v2934_v35 = vcombine.low %v195_v23, %v199_v24 }
  0x8a   :  { %1675 = vmatprep.subr.bf16.mxu0 %v2895_v52  ;;  %1761 = vmatprep.subr.bf16.mxu1 %v2897_v53  ;;  %v207_v32 = vld [vmem:[#allocation5 + $0x320] sm:$0xff]  ;;  %v2945_v38 = vcombine.high %v204_v33, %v208_v34  ;;  %v212_v41 = vld [vmem:[#allocation5 + $0x348] sm:$0xff]  ;;  %v2944_v44 = vcombine.low %v204_v33, %v208_v34 }
  0x8b   :  { %v2943_v37 = vcombine.high %v203_v31, %v207_v32  ;;  %v211_v39 = vld [vmem:[#allocation5 + $0x340] sm:$0xff]  ;;  %v216_v42 = vld [vmem:[#allocation5 + $0x368] sm:$0xff]  ;;  %v2942_v43 = vcombine.low %v203_v31, %v207_v32 }
  0x8c   :  { %v215_v40 = vld [vmem:[#allocation5 + $0x360] sm:$0xff]  ;;  %v2953_v46 = vcombine.high %v212_v41, %v216_v42  ;;  %v220_v49 = vld [vmem:[#allocation5 + $0x388] sm:$0xff]  ;;  %v2952_v52 = vcombine.low %v212_v41, %v216_v42 }
  0x8d   :  { %1676 = vmatpush1.bf16.msra.mxu0 %v2894_v59  ;;  %1762 = vmatpush1.bf16.msra.mxu1 %v2896_v60  ;;  %v2951_v45 = vcombine.high %v211_v39, %v215_v40  ;;  %v219_v47 = vld [vmem:[#allocation5 + $0x380] sm:$0xff]  ;;  %v224_v50 = vld [vmem:[#allocation5 + $0x3a8] sm:$0xff]  ;;  %v2950_v51 = vcombine.low %v211_v39, %v215_v40 }
  0x8e   :  { %1677 = vmatprep.subr.bf16.mxu0 %v2903_v61  ;;  %1763 = vmatprep.subr.bf16.mxu1 %v2905_v62  ;;  %v223_v48 = vld [vmem:[#allocation5 + $0x3a0] sm:$0xff]  ;;  %v2961_v54 = vcombine.high %v220_v49, %v224_v50  ;;  %v228_v58 = vld [vmem:[#allocation5 + $0x3c8] sm:$0xff]  ;;  %v2960_v61 = vcombine.low %v220_v49, %v224_v50 }
  0x8f   :  { %v2959_v53 = vcombine.high %v219_v47, %v223_v48  ;;  %v227_v55 = vld [vmem:[#allocation5 + $0x3c0] sm:$0xff]  ;;  %v232_v59 = vld [vmem:[#allocation5 + $0x3e8] sm:$0xff]  ;;  %v2958_v60 = vcombine.low %v219_v47, %v223_v48 }
  0x90   :  { %v231_v57 = vld [vmem:[#allocation5 + $0x3e0] sm:$0xff]  ;;  %v2969_v63 = vcombine.high %v228_v58, %v232_v59  ;;  %v236_v2 = vld [vmem:[#allocation5 + $0x408] sm:$0xff] }
  0x91   :  { %1678 = vmatpush1.bf16.msra.mxu0 %v2902_v3  ;;  %1764 = vmatpush1.bf16.msra.mxu1 %v2904_v4  ;;  %v2967_v62 = vcombine.high %v227_v55, %v231_v57  ;;  %v235_v0 = vld [vmem:[#allocation5 + $0x400] sm:$0xff]  ;;  %v240_v3 = vld [vmem:[#allocation5 + $0x428] sm:$0xff]  ;;  %v2966_v4 = vcombine.low %v227_v55, %v231_v57 }
  0x92   :  { %1679 = vmatprep.subr.bf16.mxu0 %v2911_v5  ;;  %1765 = vmatprep.subr.bf16.mxu1 %v2913_v6  ;;  %v239_v1 = vld [vmem:[#allocation5 + $0x420] sm:$0xff]  ;;  %v2968_v5 = vcombine.low %v228_v58, %v232_v59  ;;  %v2977_v7 = vcombine.high %v236_v2, %v240_v3 }
  0x93   :  { %v2975_v6 = vcombine.high %v235_v0, %v239_v1  ;;  %v243_v8 = vld [vmem:[#allocation5 + $0x440] sm:$0xff] }
  0x94   :  { %v247_v9 = vld [vmem:[#allocation5 + $0x460] sm:$0xff] }
  0x95   :  { %1680 = vmatpush1.bf16.msra.mxu0 %v2910_v11  ;;  %1766 = vmatpush1.bf16.msra.mxu1 %v2912_v12  ;;  %v3328_v10 = vld [vmem:[#allocation2] ss:$16 sps:$4 sm:$0xff]   ;;  %v244_v11 = vld [vmem:[#allocation5 + $0x448] sm:$0xff]  ;;  %v2983_v15 = vcombine.high %v243_v8, %v247_v9 }
  0x96   :  { %1681 = vmatprep.subr.bf16.mxu0 %v2919_v13  ;;  %1767 = vmatprep.subr.bf16.mxu1 %v2921_v14  ;;  %v248_v12 = vld [vmem:[#allocation5 + $0x468] sm:$0xff]  ;;  %v2974_v13 = vcombine.low %v235_v0, %v239_v1  ;;  %v2976_v14 = vcombine.low %v236_v2, %v240_v3  ;;  %v251_v17 = vld [vmem:[#allocation5 + $0x480] sm:$0xff] }
  0x97   :  { %v2985_v16 = vcombine.high %v244_v11, %v248_v12  ;;  %v255_v18 = vld [vmem:[#allocation5 + $0x4a0] sm:$0xff]  ;;  %v2984_v23 = vcombine.low %v244_v11, %v248_v12  ;;  %v308_v12 = vld [vmem:[#allocation5 + $0x648] sm:$0xff] }
  0x98   :  { %v2991_v24 = vcombine.high %v251_v17, %v255_v18  ;;  %v259_v25 = vld [vmem:[#allocation5 + $0x4c0] sm:$0xff] }
  0x99   :  { %1682 = vmatpush1.bf16.msra.mxu0 %v2918_v19  ;;  %1768 = vmatpush1.bf16.msra.mxu1 %v2920_v20  ;;  %v3329_v19 = vld [vmem:[#allocation2 + $0xc] ss:$16 sps:$4 sm:$0xff]   ;;  %v263_v26 = vld [vmem:[#allocation5 + $0x4e0] sm:$0xff] }
  0x9a   :  { %1683 = vmatprep.subr.bf16.mxu0 %v2927_v21  ;;  %1769 = vmatprep.subr.bf16.mxu1 %v2929_v22  ;;  %v252_v20 = vld [vmem:[#allocation5 + $0x488] sm:$0xff]  ;;  %v2982_v22 = vcombine.low %v243_v8, %v247_v9  ;;  %v2999_v32 = vcombine.high %v259_v25, %v263_v26  ;;  %v267_v33 = vld [vmem:[#allocation5 + $0x500] sm:$0xff] }
  0x9b   :  { %v256_v21 = vld [vmem:[#allocation5 + $0x4a8] sm:$0xff]  ;;  %v271_v34 = vld [vmem:[#allocation5 + $0x520] sm:$0xff] }
  0x9c   :  { %v2992_v31 = vcombine.low %v252_v20, %v256_v21  ;;  %v3007_v40 = vcombine.high %v267_v33, %v271_v34  ;;  %v275_v41 = vld [vmem:[#allocation5 + $0x540] sm:$0xff] }
  0x9d   :  { %1684 = vmatpush1.bf16.msra.mxu0 %v2926_v27  ;;  %1770 = vmatpush1.bf16.msra.mxu1 %v2928_v28  ;;  %v260_v27 = vld [vmem:[#allocation5 + $0x4c8] sm:$0xff]  ;;  %v2993_v28 = vcombine.high %v252_v20, %v256_v21  ;;  %v279_v42 = vld [vmem:[#allocation5 + $0x560] sm:$0xff] }
  0x9e   :  { %1685 = vmatprep.subr.bf16.mxu0 %v2935_v29  ;;  %1771 = vmatprep.subr.bf16.mxu1 %v2937_v30  ;;  %v264_v29 = vld [vmem:[#allocation5 + $0x4e8] sm:$0xff]  ;;  %v2990_v30 = vcombine.low %v251_v17, %v255_v18  ;;  %v3015_v48 = vcombine.high %v275_v41, %v279_v42  ;;  %v283_v49 = vld [vmem:[#allocation5 + $0x580] sm:$0xff] }
  0x9f   :  { %v3000_v39 = vcombine.low %v260_v27, %v264_v29  ;;  %v287_v50 = vld [vmem:[#allocation5 + $0x5a0] sm:$0xff]  ;;  %v316_v20 = vld [vmem:[#allocation5 + $0x688] sm:$0xff] }
  0xa0   :  { %v3023_v57 = vcombine.high %v283_v49, %v287_v50  ;;  %v291_v58 = vld [vmem:[#allocation5 + $0x5c0] sm:$0xff] }
  0xa1   :  { %1686 = vmatpush1.bf16.msra.mxu0 %v2934_v35  ;;  %1772 = vmatpush1.bf16.msra.mxu1 %v2936_v36  ;;  %v268_v35 = vld [vmem:[#allocation5 + $0x508] sm:$0xff]  ;;  %v3001_v36 = vcombine.high %v260_v27, %v264_v29  ;;  %v295_v59 = vld [vmem:[#allocation5 + $0x5e0] sm:$0xff] }
  0xa2   :  { %1687 = vmatprep.subr.bf16.mxu0 %v2943_v37  ;;  %1773 = vmatprep.subr.bf16.mxu1 %v2945_v38  ;;  %v272_v37 = vld [vmem:[#allocation5 + $0x528] sm:$0xff]  ;;  %v2998_v38 = vcombine.low %v259_v25, %v263_v26  ;;  %v3031_v1 = vcombine.high %v291_v58, %v295_v59  ;;  %v299_v2 = vld [vmem:[#allocation5 + $0x600] sm:$0xff] }
  0xa3   :  { %v3008_v47 = vcombine.low %v268_v35, %v272_v37  ;;  %v303_v3 = vld [vmem:[#allocation5 + $0x620] sm:$0xff] }
  0xa4   :  { %v3039_v9 = vcombine.high %v299_v2, %v303_v3  ;;  %v311_v11 = vld [vmem:[#allocation5 + $0x660] sm:$0xff] }
  0xa5   :  { %1688 = vmatpush1.bf16.msra.mxu0 %v2942_v43  ;;  %1774 = vmatpush1.bf16.msra.mxu1 %v2944_v44  ;;  %v276_v43 = vld [vmem:[#allocation5 + $0x548] sm:$0xff]  ;;  %v3009_v44 = vcombine.high %v268_v35, %v272_v37  ;;  %v315_v18 = vld [vmem:[#allocation5 + $0x680] sm:$0xff] }
  0xa6   :  { %1689 = vmatprep.subr.bf16.mxu0 %v2951_v45  ;;  %1775 = vmatprep.subr.bf16.mxu1 %v2953_v46  ;;  %v280_v45 = vld [vmem:[#allocation5 + $0x568] sm:$0xff]  ;;  %v3006_v46 = vcombine.low %v267_v33, %v271_v34  ;;  %v323_v26 = vld [vmem:[#allocation5 + $0x6c0] sm:$0xff] }
  0xa7   :  { %v3016_v55 = vcombine.low %v276_v43, %v280_v45  ;;  %v327_v27 = vld [vmem:[#allocation5 + $0x6e0] sm:$0xff] }
  0xa8   :  { %v3063_v33 = vcombine.high %v323_v26, %v327_v27  ;;  %v331_v34 = vld [vmem:[#allocation5 + $0x700] sm:$0xff] }
  0xa9   :  { %1690 = vmatpush1.bf16.msra.mxu0 %v2950_v51  ;;  %1776 = vmatpush1.bf16.msra.mxu1 %v2952_v52  ;;  %v284_v51 = vld [vmem:[#allocation5 + $0x588] sm:$0xff]  ;;  %v3017_v52 = vcombine.high %v276_v43, %v280_v45  ;;  %v335_v35 = vld [vmem:[#allocation5 + $0x720] sm:$0xff] }
  0xaa   :  { %1691 = vmatprep.subr.bf16.mxu0 %v2959_v53  ;;  %1777 = vmatprep.subr.bf16.mxu1 %v2961_v54  ;;  %v288_v53 = vld [vmem:[#allocation5 + $0x5a8] sm:$0xff]  ;;  %v3014_v54 = vcombine.low %v275_v41, %v279_v42  ;;  %v3071_v41 = vcombine.high %v331_v34, %v335_v35  ;;  %v339_v42 = vld [vmem:[#allocation5 + $0x740] sm:$0xff] }
  0xab   :  { %v3024_v0 = vcombine.low %v284_v51, %v288_v53  ;;  %v343_v43 = vld [vmem:[#allocation5 + $0x760] sm:$0xff] }
  0xad   :  { %1692 = vmatpush1.bf16.msra.mxu0 %v2958_v60  ;;  %1778 = vmatpush1.bf16.msra.mxu1 %v2960_v61  ;;  %v292_v60 = vld [vmem:[#allocation5 + $0x5c8] sm:$0xff]  ;;  %v3025_v61 = vcombine.high %v284_v51, %v288_v53  ;;  %v351_v51 = vld [vmem:[#allocation5 + $0x7a0] sm:$0xff] }
  0xae   :  { %1693 = vmatprep.subr.bf16.mxu0 %v2967_v62  ;;  %1779 = vmatprep.subr.bf16.mxu1 %v2969_v63  ;;  %v296_v62 = vld [vmem:[#allocation5 + $0x5e8] sm:$0xff]  ;;  %v3022_v63 = vcombine.low %v283_v49, %v287_v50  ;;  %v3079_v49 = vcombine.high %v339_v42, %v343_v43  ;;  %v347_v50 = vld [vmem:[#allocation5 + $0x780] sm:$0xff] }
  0xaf   :  { %v3032_v8 = vcombine.low %v292_v60, %v296_v62 }
  0xb1   :  { %1694 = vmatpush1.bf16.msra.mxu0 %v2966_v4  ;;  %1780 = vmatpush1.bf16.msra.mxu1 %v2968_v5  ;;  %v300_v4 = vld [vmem:[#allocation5 + $0x608] sm:$0xff]  ;;  %v3033_v5 = vcombine.high %v292_v60, %v296_v62  ;;  %v359_v60 = vld [vmem:[#allocation5 + $0x7e0] sm:$0xff] }
  0xb2   :  { %1706 = vmatprep.subr.bf16.mxu0 %v2975_v6  ;;  %1792 = vmatprep.subr.bf16.mxu1 %v2977_v7  ;;  %v304_v6 = vld [vmem:[#allocation5 + $0x628] sm:$0xff]  ;;  %v3030_v7 = vcombine.low %v291_v58, %v295_v59  ;;  %v3087_v58 = vcombine.high %v347_v50, %v351_v51  ;;  %v355_v59 = vld [vmem:[#allocation5 + $0x7c0] sm:$0xff] }
  0xb4   :  { %1696 = vmatmul.mubr.bf16.vlgmr.msra.gmra.mrb[0].mxu0 %v3328_v10  ;;  %1782 = vmatmul.mubr.bf16.vlgmr.msra.gmra.mrb[0].mxu1 %v3328_v10  ;;  %v307_v10 = vld [vmem:[#allocation5 + $0x640] sm:$0xff] }
  0xb5   :  { %1707 = vmatpush1.bf16.msra.mxu0 %v2974_v13  ;;  %1793 = vmatpush1.bf16.msra.mxu1 %v2976_v14  ;;  %v3041_v13 = vcombine.high %v300_v4, %v304_v6  ;;  %v312_v14 = vld [vmem:[#allocation5 + $0x668] sm:$0xff]  ;;  %v3047_v17 = vcombine.high %v307_v10, %v311_v11 }
  0xb6   :  { %1708 = vmatprep.subr.bf16.mxu0 %v2983_v15  ;;  %1794 = vmatprep.subr.bf16.mxu1 %v2985_v16  ;;  %v3038_v15 = vcombine.low %v299_v2, %v303_v3  ;;  %v3040_v16 = vcombine.low %v300_v4, %v304_v6  ;;  %v3049_v21 = vcombine.high %v308_v12, %v312_v14  ;;  %v109_v3 = vld [vmem:[#allocation5 + $0x10] sm:$0xff] }
  0xb7   :  { %1738 = vmatprep.mubr.bf16.mxu0 %v3329_v19  ;;  %1824 = vmatprep.mubr.bf16.mxu1 %v3329_v19  ;;  %v319_v19 = vld [vmem:[#allocation5 + $0x6a0] sm:$0xff]  ;;  %v3095_v2 = vcombine.high %v355_v59, %v359_v60  ;;  %v113_v4 = vld [vmem:[#allocation5 + $0x30] sm:$0xff] }
  0xb8   :  { %v3055_v25 = vcombine.high %v315_v18, %v319_v19 }
  0xb9   :  { %1709 = vmatpush1.bf16.msra.mxu0 %v2982_v22  ;;  %1795 = vmatpush1.bf16.msra.mxu1 %v2984_v23  ;;  %v320_v22 = vld [vmem:[#allocation5 + $0x6a8] sm:$0xff]  ;;  %v3046_v23 = vcombine.low %v307_v10, %v311_v11  ;;  %v2851_v11 = vcombine.high %v109_v3, %v113_v4 }
  0xba   :  { %1710 = vmatprep.subr.bf16.mxu0 %v2991_v24  ;;  %1796 = vmatprep.subr.bf16.mxu1 %v2993_v28  ;;  %v3048_v24 = vcombine.low %v308_v12, %v312_v14  ;;  %v324_v28 = vld [vmem:[#allocation5 + $0x6c8] sm:$0xff]  ;;  %v3057_v29 = vcombine.high %v316_v20, %v320_v22  ;;  %v117_v12 = vld [vmem:[#allocation5 + $0x50] sm:$0xff]  ;;  %v118_v14 = vld [vmem:[#allocation5 + $0x58] sm:$0xff] }
  0xbb   :  { %v3716_v10 = vld [vmem:[#allocation2 + $0x8] ss:$16 sps:$4 sm:$0xff]  }
  0xbd   :  { %1711 = vmatpush1.bf16.msra.mxu0 %v2990_v30  ;;  %1797 = vmatpush1.bf16.msra.mxu1 %v2992_v31  ;;  %v328_v30 = vld [vmem:[#allocation5 + $0x6e8] sm:$0xff]  ;;  %v3054_v31 = vcombine.low %v315_v18, %v319_v19  ;;  %v125_v18 = vld [vmem:[#allocation5 + $0x90] sm:$0xff] }
  0xbe   :  { %1712 = vmatprep.subr.bf16.mxu0 %v2999_v32  ;;  %1798 = vmatprep.subr.bf16.mxu1 %v3001_v36  ;;  %v3056_v32 = vcombine.low %v316_v20, %v320_v22  ;;  %v332_v36 = vld [vmem:[#allocation5 + $0x708] sm:$0xff]  ;;  %v3065_v37 = vcombine.high %v324_v28, %v328_v30  ;;  %v129_v19 = vld [vmem:[#allocation5 + $0xb0] sm:$0xff]  ;;  %v126_v22 = vld [vmem:[#allocation5 + $0x98] sm:$0xff] }
  0xc1   :  { %1713 = vmatpush1.bf16.msra.mxu0 %v2998_v38  ;;  %1799 = vmatpush1.bf16.msra.mxu1 %v3000_v39  ;;  %v336_v38 = vld [vmem:[#allocation5 + $0x728] sm:$0xff]  ;;  %v3062_v39 = vcombine.low %v323_v26, %v327_v27  ;;  %v2867_v27 = vcombine.high %v125_v18, %v129_v19 }
  0xc2   :  { %1714 = vmatprep.subr.bf16.mxu0 %v3007_v40  ;;  %1800 = vmatprep.subr.bf16.mxu1 %v3009_v44  ;;  %v3064_v40 = vcombine.low %v324_v28, %v328_v30  ;;  %v340_v44 = vld [vmem:[#allocation5 + $0x748] sm:$0xff]  ;;  %v3073_v45 = vcombine.high %v332_v36, %v336_v38  ;;  %v133_v28 = vld [vmem:[#allocation5 + $0xd0] sm:$0xff]  ;;  %v134_v30 = vld [vmem:[#allocation5 + $0xd8] sm:$0xff] }
  0xc5   :  { %1715 = vmatpush1.bf16.msra.mxu0 %v3006_v46  ;;  %1801 = vmatpush1.bf16.msra.mxu1 %v3008_v47  ;;  %v344_v46 = vld [vmem:[#allocation5 + $0x768] sm:$0xff]  ;;  %v3070_v47 = vcombine.low %v331_v34, %v335_v35 }
  0xc6   :  { %1716 = vmatprep.subr.bf16.mxu0 %v3015_v48  ;;  %1802 = vmatprep.subr.bf16.mxu1 %v3017_v52  ;;  %v3072_v48 = vcombine.low %v332_v36, %v336_v38  ;;  %v348_v52 = vld [vmem:[#allocation5 + $0x788] sm:$0xff]  ;;  %v3081_v53 = vcombine.high %v340_v44, %v344_v46  ;;  %v141_v36 = vld [vmem:[#allocation5 + $0x110] sm:$0xff] }
  0xc9   :  { %1717 = vmatpush1.bf16.msra.mxu0 %v3014_v54  ;;  %1803 = vmatpush1.bf16.msra.mxu1 %v3016_v55  ;;  %v352_v54 = vld [vmem:[#allocation5 + $0x7a8] sm:$0xff]  ;;  %v3078_v55 = vcombine.low %v339_v42, %v343_v43 }
  0xca   :  { %1718 = vmatprep.subr.bf16.mxu0 %v3023_v57  ;;  %1804 = vmatprep.subr.bf16.mxu1 %v3025_v61  ;;  %v3080_v57 = vcombine.low %v340_v44, %v344_v46  ;;  %v356_v61 = vld [vmem:[#allocation5 + $0x7c8] sm:$0xff]  ;;  %v3089_v62 = vcombine.high %v348_v52, %v352_v54  ;;  %v149_v44 = vld [vmem:[#allocation5 + $0x150] sm:$0xff]  ;;  %v150_v46 = vld [vmem:[#allocation5 + $0x158] sm:$0xff] }
  0xcd   :  { %1719 = vmatpush1.bf16.msra.mxu0 %v3022_v63  ;;  %1805 = vmatpush1.bf16.msra.mxu1 %v3024_v0  ;;  %v360_v63 = vld [vmem:[#allocation5 + $0x7e8] sm:$0xff]  ;;  %v3086_v0 = vcombine.low %v347_v50, %v351_v51 }
  0xce   :  { %1720 = vmatprep.subr.bf16.mxu0 %v3031_v1  ;;  %1806 = vmatprep.subr.bf16.mxu1 %v3033_v5  ;;  %v3088_v1 = vcombine.low %v348_v52, %v352_v54  ;;  %v110_v5 = vld [vmem:[#allocation5 + $0x18] sm:$0xff]  ;;  %v3097_v6 = vcombine.high %v356_v61, %v360_v63  ;;  %v157_v52 = vld [vmem:[#allocation5 + $0x190] sm:$0xff] }
  0xcf   :  { %v158_v54 = vld [vmem:[#allocation5 + $0x198] sm:$0xff] }
  0xd1   :  { %1721 = vmatpush1.bf16.msra.mxu0 %v3030_v7  ;;  %1807 = vmatpush1.bf16.msra.mxu1 %v3032_v8  ;;  %v114_v7 = vld [vmem:[#allocation5 + $0x38] sm:$0xff]  ;;  %v3094_v8 = vcombine.low %v355_v59, %v359_v60 }
  0xd2   :  { %1722 = vmatprep.subr.bf16.mxu0 %v3039_v9  ;;  %1808 = vmatprep.subr.bf16.mxu1 %v3041_v13  ;;  %v3096_v9 = vcombine.low %v356_v61, %v360_v63  ;;  %v121_v13 = vld [vmem:[#allocation5 + $0x70] sm:$0xff]  ;;  %v2852_v20 = vcombine.low %v110_v5, %v114_v7  ;;  %v166_v63 = vld [vmem:[#allocation5 + $0x1d8] sm:$0xff] }
  0xd3   :  { %v165_v61 = vld [vmem:[#allocation5 + $0x1d0] sm:$0xff] }
  0xd5   :  { %1723 = vmatpush1.bf16.msra.mxu0 %v3038_v15  ;;  %1809 = vmatpush1.bf16.msra.mxu1 %v3040_v16  ;;  %v2853_v15 = vcombine.high %v110_v5, %v114_v7  ;;  %v122_v16 = vld [vmem:[#allocation5 + $0x78] sm:$0xff]  ;;  %v173_v5 = vld [vmem:[#allocation5 + $0x210] sm:$0xff] }
  0xd6   :  { %1724 = vmatprep.subr.bf16.mxu0 %v3047_v17  ;;  %1810 = vmatprep.subr.bf16.mxu1 %v3049_v21  ;;  %v2850_v17 = vcombine.low %v109_v3, %v113_v4  ;;  %v2859_v21 = vcombine.high %v117_v12, %v121_v13  ;;  %v2860_v26 = vcombine.low %v118_v14, %v122_v16  ;;  %v174_v7 = vld [vmem:[#allocation5 + $0x218] sm:$0xff] }
  0xd9   :  { %1725 = vmatpush1.bf16.msra.mxu0 %v3046_v23  ;;  %1811 = vmatpush1.bf16.msra.mxu1 %v3048_v24  ;;  %v130_v23 = vld [vmem:[#allocation5 + $0xb8] sm:$0xff]  ;;  %v2861_v24 = vcombine.high %v118_v14, %v122_v16  ;;  %v181_v14 = vld [vmem:[#allocation5 + $0x250] sm:$0xff] }
  0xda   :  { %1726 = vmatprep.subr.bf16.mxu0 %v3055_v25  ;;  %1812 = vmatprep.subr.bf16.mxu1 %v3057_v29  ;;  %v2858_v25 = vcombine.low %v117_v12, %v121_v13  ;;  %v137_v29 = vld [vmem:[#allocation5 + $0xf0] sm:$0xff]  ;;  %v2868_v34 = vcombine.low %v126_v22, %v130_v23  ;;  %v182_v16 = vld [vmem:[#allocation5 + $0x258] sm:$0xff] }
  0xdb   :  { %v2875_v35 = vcombine.high %v133_v28, %v137_v29 }
  0xdd   :  { %1727 = vmatpush1.bf16.msra.mxu0 %v3054_v31  ;;  %1813 = vmatpush1.bf16.msra.mxu1 %v3056_v32  ;;  %v2869_v31 = vcombine.high %v126_v22, %v130_v23  ;;  %v138_v32 = vld [vmem:[#allocation5 + $0xf8] sm:$0xff]  ;;  %v189_v22 = vld [vmem:[#allocation5 + $0x290] sm:$0xff] }
  0xde   :  { %1728 = vmatprep.subr.bf16.mxu0 %v3063_v33  ;;  %1814 = vmatprep.subr.bf16.mxu1 %v3065_v37  ;;  %v2866_v33 = vcombine.low %v125_v18, %v129_v19  ;;  %v145_v37 = vld [vmem:[#allocation5 + $0x130] sm:$0xff]  ;;  %v2877_v38 = vcombine.high %v134_v30, %v138_v32  ;;  %v2876_v42 = vcombine.low %v134_v30, %v138_v32  ;;  %v198_v32 = vld [vmem:[#allocation5 + $0x2d8] sm:$0xff] }
  0xdf   :  { %v2883_v43 = vcombine.high %v141_v36, %v145_v37  ;;  %v193_v23 = vld [vmem:[#allocation5 + $0x2b0] sm:$0xff] }
  0xe0   :  { %v197_v30 = vld [vmem:[#allocation5 + $0x2d0] sm:$0xff] }
  0xe1   :  { %1729 = vmatpush1.bf16.msra.mxu0 %v3062_v39  ;;  %1815 = vmatpush1.bf16.msra.mxu1 %v3064_v40  ;;  %v142_v39 = vld [vmem:[#allocation5 + $0x118] sm:$0xff] }
  0xe2   :  { %1730 = vmatprep.subr.bf16.mxu0 %v3071_v41  ;;  %1816 = vmatprep.subr.bf16.mxu1 %v3073_v45  ;;  %v146_v40 = vld [vmem:[#allocation5 + $0x138] sm:$0xff]  ;;  %v2874_v41 = vcombine.low %v133_v28, %v137_v29  ;;  %v153_v45 = vld [vmem:[#allocation5 + $0x170] sm:$0xff]  ;;  %v2931_v28 = vcombine.high %v189_v22, %v193_v23 }
  0xe3   :  { %v2891_v50 = vcombine.high %v149_v44, %v153_v45 }
  0xe5   :  { %1731 = vmatpush1.bf16.msra.mxu0 %v3070_v47  ;;  %1817 = vmatpush1.bf16.msra.mxu1 %v3072_v48  ;;  %v154_v47 = vld [vmem:[#allocation5 + $0x178] sm:$0xff]  ;;  %v2882_v48 = vcombine.low %v141_v36, %v145_v37 }
  0xe6   :  { %1732 = vmatprep.subr.bf16.mxu0 %v3079_v49  ;;  %1818 = vmatprep.subr.bf16.mxu1 %v3081_v53  ;;  %v2884_v49 = vcombine.low %v142_v39, %v146_v40  ;;  %v2893_v51 = vcombine.high %v150_v46, %v154_v47  ;;  %v161_v53 = vld [vmem:[#allocation5 + $0x1b0] sm:$0xff] }
  0xe7   :  { %v2899_v59 = vcombine.high %v157_v52, %v161_v53 }
  0xe9   :  { %1733 = vmatpush1.bf16.msra.mxu0 %v3078_v55  ;;  %1819 = vmatpush1.bf16.msra.mxu1 %v3080_v57  ;;  %v162_v55 = vld [vmem:[#allocation5 + $0x1b8] sm:$0xff]  ;;  %v2890_v57 = vcombine.low %v149_v44, %v153_v45  ;;  %v213_v45 = vld [vmem:[#allocation5 + $0x350] sm:$0xff] }
  0xea   :  { %1734 = vmatprep.subr.bf16.mxu0 %v3087_v58  ;;  %1820 = vmatprep.subr.bf16.mxu1 %v3089_v62  ;;  %v2892_v58 = vcombine.low %v150_v46, %v154_v47  ;;  %v2901_v60 = vcombine.high %v158_v54, %v162_v55  ;;  %v169_v62 = vld [vmem:[#allocation5 + $0x1f0] sm:$0xff]  ;;  %v214_v47 = vld [vmem:[#allocation5 + $0x358] sm:$0xff] }
  0xeb   :  { %v2907_v3 = vcombine.high %v165_v61, %v169_v62  ;;  %v217_v46 = vld [vmem:[#allocation5 + $0x370] sm:$0xff] }
  0xed   :  { %1735 = vmatpush1.bf16.msra.mxu0 %v3086_v0  ;;  %1821 = vmatpush1.bf16.msra.mxu1 %v3088_v1  ;;  %v170_v0 = vld [vmem:[#allocation5 + $0x1f8] sm:$0xff]  ;;  %v2898_v1 = vcombine.low %v157_v52, %v161_v53  ;;  %v221_v53 = vld [vmem:[#allocation5 + $0x390] sm:$0xff] }
  0xee   :  { %1736 = vmatprep.subr.bf16.mxu0 %v3095_v2  ;;  %1822 = vmatprep.subr.bf16.mxu1 %v3097_v6  ;;  %v2900_v2 = vcombine.low %v158_v54, %v162_v55  ;;  %v2909_v4 = vcombine.high %v166_v63, %v170_v0  ;;  %v177_v6 = vld [vmem:[#allocation5 + $0x230] sm:$0xff]  ;;  %v222_v55 = vld [vmem:[#allocation5 + $0x398] sm:$0xff] }
  0xef   :  { %v2915_v12 = vcombine.high %v173_v5, %v177_v6  ;;  %v2914_v18 = vcombine.low %v173_v5, %v177_v6  ;;  %v225_v54 = vld [vmem:[#allocation5 + $0x3b0] sm:$0xff] }
  0xf0   :  { %v237_v6 = vld [vmem:[#allocation5 + $0x410] sm:$0xff] }
  0xf1   :  { %1737 = vmatpush1.bf16.msra.mxu0 %v3094_v8  ;;  %1823 = vmatpush1.bf16.msra.mxu1 %v3096_v9  ;;  %v178_v8 = vld [vmem:[#allocation5 + $0x238] sm:$0xff]  ;;  %v2906_v9 = vcombine.low %v165_v61, %v169_v62  ;;  %v229_v62 = vld [vmem:[#allocation5 + $0x3d0] sm:$0xff] }
  0xf2   :  { %1835 = vmatprep.subr.bf16.mxu0 %v2851_v11  ;;  %1921 = vmatprep.subr.bf16.mxu1 %v2853_v15  ;;  %v2908_v11 = vcombine.low %v166_v63, %v170_v0  ;;  %v2917_v13 = vcombine.high %v174_v7, %v178_v8  ;;  %v185_v15 = vld [vmem:[#allocation5 + $0x270] sm:$0xff]  ;;  %v2916_v19 = vcombine.low %v174_v7, %v178_v8  ;;  %v230_v0 = vld [vmem:[#allocation5 + $0x3d8] sm:$0xff] }
  0xf3   :  { %v233_v63 = vld [vmem:[#allocation5 + $0x3f0] sm:$0xff]  ;;  %v238_v8 = vld [vmem:[#allocation5 + $0x418] sm:$0xff] }
  0xf4   :  { %1739 = vmatmul.mubr.bf16.vlgmr.msra.gmra.mrb[0].mxu0 %v3716_v10  ;;  %1825 = vmatmul.mubr.bf16.vlgmr.msra.gmra.mrb[0].mxu1 %v3716_v10  ;;  %v241_v7 = vld [vmem:[#allocation5 + $0x430] sm:$0xff] }
  0xf5   :  { %1836 = vmatpush1.bf16.msra.mxu0 %v2850_v17  ;;  %1922 = vmatpush1.bf16.msra.mxu1 %v2852_v20  ;;  %v186_v17 = vld [vmem:[#allocation5 + $0x278] sm:$0xff]  ;;  %v2923_v20 = vcombine.high %v181_v14, %v185_v15 }
  0xf6   :  { %1837 = vmatprep.subr.bf16.mxu0 %v2859_v21  ;;  %1923 = vmatprep.subr.bf16.mxu1 %v2861_v24  ;;  %v2925_v21 = vcombine.high %v182_v16, %v186_v17  ;;  %v190_v24 = vld [vmem:[#allocation5 + $0x298] sm:$0xff] }
  0xf7   :  { %1867 = vmatprep.mubr.bf16.mxu0 %v3712_v56  ;;  %1953 = vmatprep.mubr.bf16.mxu1 %v3712_v56  ;;  %v2885_v56 = vcombine.high %v142_v39, %v146_v40  ;;  %v209_v39 = vld [vmem:[#allocation5 + $0x330] sm:$0xff]  ;;  %v206_v40 = vld [vmem:[#allocation5 + $0x318] sm:$0xff] }
  0xf9   :  { %1838 = vmatpush1.bf16.msra.mxu0 %v2858_v25  ;;  %1924 = vmatpush1.bf16.msra.mxu1 %v2860_v26  ;;  %v194_v25 = vld [vmem:[#allocation5 + $0x2b8] sm:$0xff]  ;;  %v2922_v26 = vcombine.low %v181_v14, %v185_v15  ;;  %v245_v15 = vld [vmem:[#allocation5 + $0x450] sm:$0xff] }
  0xfa   :  { %1839 = vmatprep.subr.bf16.mxu0 %v2867_v27  ;;  %1925 = vmatprep.subr.bf16.mxu1 %v2869_v31  ;;  %v2924_v27 = vcombine.low %v182_v16, %v186_v17  ;;  %v2933_v29 = vcombine.high %v190_v24, %v194_v25  ;;  %v201_v31 = vld [vmem:[#allocation5 + $0x2f0] sm:$0xff]  ;;  %v246_v17 = vld [vmem:[#allocation5 + $0x458] sm:$0xff] }
  0xfb   :  { %v2939_v36 = vcombine.high %v197_v30, %v201_v31  ;;  %v249_v16 = vld [vmem:[#allocation5 + $0x470] sm:$0xff] }
  0xfd   :  { %1840 = vmatpush1.bf16.msra.mxu0 %v2866_v33  ;;  %1926 = vmatpush1.bf16.msra.mxu1 %v2868_v34  ;;  %v202_v33 = vld [vmem:[#allocation5 + $0x2f8] sm:$0xff]  ;;  %v2930_v34 = vcombine.low %v189_v22, %v193_v23  ;;  %v253_v23 = vld [vmem:[#allocation5 + $0x490] sm:$0xff] }
  0xfe   :  { %1841 = vmatprep.subr.bf16.mxu0 %v2875_v35  ;;  %1927 = vmatprep.subr.bf16.mxu1 %v2877_v38  ;;  %v2932_v35 = vcombine.low %v190_v24, %v194_v25  ;;  %v2941_v37 = vcombine.high %v198_v32, %v202_v33  ;;  %v205_v38 = vld [vmem:[#allocation5 + $0x310] sm:$0xff] }
  0xff   :  { %v257_v24 = vld [vmem:[#allocation5 + $0x4b0] sm:$0xff] }
 0x100   :  { %v3422_v25 = vld [vmem:[#allocation2] ss:$16 sps:$4 sm:$0xff]  }
 0x101   :  { %1842 = vmatpush1.bf16.msra.mxu0 %v2874_v41  ;;  %1928 = vmatpush1.bf16.msra.mxu1 %v2876_v42  ;;  %v210_v41 = vld [vmem:[#allocation5 + $0x338] sm:$0xff]  ;;  %v2938_v42 = vcombine.low %v197_v30, %v201_v31  ;;  %v2995_v30 = vcombine.high %v253_v23, %v257_v24 }
 0x102   :  { %1843 = vmatprep.subr.bf16.mxu0 %v2883_v43  ;;  %1929 = vmatprep.subr.bf16.mxu1 %v2885_v56  ;;  %v2940_v43 = vcombine.low %v198_v32, %v202_v33  ;;  %v2947_v56 = vcombine.high %v205_v38, %v209_v39  ;;  %v2949_v44 = vcombine.high %v206_v40, %v210_v41  ;;  %v261_v32 = vld [vmem:[#allocation5 + $0x4d0] sm:$0xff] }
 0x103   :  { %v265_v33 = vld [vmem:[#allocation5 + $0x4f0] sm:$0xff] }
 0x105   :  { %1844 = vmatpush1.bf16.msra.mxu0 %v2882_v48  ;;  %1930 = vmatpush1.bf16.msra.mxu1 %v2884_v49  ;;  %v218_v48 = vld [vmem:[#allocation5 + $0x378] sm:$0xff]  ;;  %v2946_v49 = vcombine.low %v205_v38, %v209_v39  ;;  %v3003_v39 = vcombine.high %v261_v32, %v265_v33 }
 0x106   :  { %1845 = vmatprep.subr.bf16.mxu0 %v2891_v50  ;;  %1931 = vmatprep.subr.bf16.mxu1 %v2893_v51  ;;  %v2948_v50 = vcombine.low %v206_v40, %v210_v41  ;;  %v2955_v51 = vcombine.high %v213_v45, %v217_v46  ;;  %v2957_v52 = vcombine.high %v214_v47, %v218_v48  ;;  %v269_v41 = vld [vmem:[#allocation5 + $0x510] sm:$0xff] }
 0x109   :  { %1846 = vmatpush1.bf16.msra.mxu0 %v2890_v57  ;;  %1932 = vmatpush1.bf16.msra.mxu1 %v2892_v58  ;;  %v226_v57 = vld [vmem:[#allocation5 + $0x3b8] sm:$0xff]  ;;  %v2954_v58 = vcombine.low %v213_v45, %v217_v46 }
 0x10a   :  { %1847 = vmatprep.subr.bf16.mxu0 %v2899_v59  ;;  %1933 = vmatprep.subr.bf16.mxu1 %v2901_v60  ;;  %v2956_v59 = vcombine.low %v214_v47, %v218_v48  ;;  %v2963_v60 = vcombine.high %v221_v53, %v225_v54  ;;  %v2965_v61 = vcombine.high %v222_v55, %v226_v57  ;;  %v277_v48 = vld [vmem:[#allocation5 + $0x550] sm:$0xff] }
 0x10d   :  { %1848 = vmatpush1.bf16.msra.mxu0 %v2898_v1  ;;  %1934 = vmatpush1.bf16.msra.mxu1 %v2900_v2  ;;  %v234_v1 = vld [vmem:[#allocation5 + $0x3f8] sm:$0xff]  ;;  %v2962_v2 = vcombine.low %v221_v53, %v225_v54 }
 0x10e   :  { %1849 = vmatprep.subr.bf16.mxu0 %v2907_v3  ;;  %1935 = vmatprep.subr.bf16.mxu1 %v2909_v4  ;;  %v2964_v3 = vcombine.low %v222_v55, %v226_v57  ;;  %v2971_v4 = vcombine.high %v229_v62, %v233_v63  ;;  %v2973_v5 = vcombine.high %v230_v0, %v234_v1  ;;  %v285_v57 = vld [vmem:[#allocation5 + $0x590] sm:$0xff] }
 0x111   :  { %1850 = vmatpush1.bf16.msra.mxu0 %v2906_v9  ;;  %1936 = vmatpush1.bf16.msra.mxu1 %v2908_v11  ;;  %v242_v9 = vld [vmem:[#allocation5 + $0x438] sm:$0xff]  ;;  %v2970_v11 = vcombine.low %v229_v62, %v233_v63 }
 0x112   :  { %1851 = vmatprep.subr.bf16.mxu0 %v2915_v12  ;;  %1937 = vmatprep.subr.bf16.mxu1 %v2917_v13  ;;  %v2972_v12 = vcombine.low %v230_v0, %v234_v1  ;;  %v2979_v13 = vcombine.high %v237_v6, %v241_v7  ;;  %v2981_v14 = vcombine.high %v238_v8, %v242_v9  ;;  %v293_v1 = vld [vmem:[#allocation5 + $0x5d0] sm:$0xff] }
 0x115   :  { %1852 = vmatpush1.bf16.msra.mxu0 %v2914_v18  ;;  %1938 = vmatpush1.bf16.msra.mxu1 %v2916_v19  ;;  %v250_v18 = vld [vmem:[#allocation5 + $0x478] sm:$0xff]  ;;  %v2978_v19 = vcombine.low %v237_v6, %v241_v7 }
 0x116   :  { %1853 = vmatprep.subr.bf16.mxu0 %v2923_v20  ;;  %1939 = vmatprep.subr.bf16.mxu1 %v2925_v21  ;;  %v2980_v20 = vcombine.low %v238_v8, %v242_v9  ;;  %v2987_v21 = vcombine.high %v245_v15, %v249_v16  ;;  %v2989_v22 = vcombine.high %v246_v17, %v250_v18  ;;  %v301_v9 = vld [vmem:[#allocation5 + $0x610] sm:$0xff] }
 0x119   :  { %1854 = vmatpush1.bf16.msra.mxu0 %v2922_v26  ;;  %1940 = vmatpush1.bf16.msra.mxu1 %v2924_v27  ;;  %v254_v26 = vld [vmem:[#allocation5 + $0x498] sm:$0xff] }
 0x11a   :  { %1855 = vmatprep.subr.bf16.mxu0 %v2931_v28  ;;  %1941 = vmatprep.subr.bf16.mxu1 %v2933_v29  ;;  %v258_v27 = vld [vmem:[#allocation5 + $0x4b8] sm:$0xff]  ;;  %v2986_v28 = vcombine.low %v245_v15, %v249_v16  ;;  %v2988_v29 = vcombine.low %v246_v17, %v250_v18  ;;  %v309_v18 = vld [vmem:[#allocation5 + $0x650] sm:$0xff] }
 0x11b   :  { %v2997_v31 = vcombine.high %v254_v26, %v258_v27  ;;  %v2996_v38 = vcombine.low %v254_v26, %v258_v27  ;;  %v317_v26 = vld [vmem:[#allocation5 + $0x690] sm:$0xff] }
 0x11c   :  { %v321_v27 = vld [vmem:[#allocation5 + $0x6b0] sm:$0xff] }
 0x11d   :  { %1856 = vmatpush1.bf16.msra.mxu0 %v2930_v34  ;;  %1942 = vmatpush1.bf16.msra.mxu1 %v2932_v35  ;;  %v3423_v34 = vld [vmem:[#allocation2 + $0xc] ss:$16 sps:$4 sm:$0xff]  }
 0x11e   :  { %1857 = vmatprep.subr.bf16.mxu0 %v2939_v36  ;;  %1943 = vmatprep.subr.bf16.mxu1 %v2941_v37  ;;  %v262_v35 = vld [vmem:[#allocation5 + $0x4d8] sm:$0xff]  ;;  %v2994_v37 = vcombine.low %v253_v23, %v257_v24 }
 0x11f   :  { %v266_v36 = vld [vmem:[#allocation5 + $0x4f8] sm:$0xff] }
 0x120   :  { %v3005_v40 = vcombine.high %v262_v35, %v266_v36  ;;  %v3004_v45 = vcombine.low %v262_v35, %v266_v36  ;;  %v329_v35 = vld [vmem:[#allocation5 + $0x6f0] sm:$0xff]  ;;  %v326_v36 = vld [vmem:[#allocation5 + $0x6d8] sm:$0xff] }
 0x121   :  { %1858 = vmatpush1.bf16.msra.mxu0 %v2938_v42  ;;  %1944 = vmatpush1.bf16.msra.mxu1 %v2940_v43  ;;  %v273_v42 = vld [vmem:[#allocation5 + $0x530] sm:$0xff]  ;;  %v270_v43 = vld [vmem:[#allocation5 + $0x518] sm:$0xff] }
 0x122   :  { %1859 = vmatprep.subr.bf16.mxu0 %v2947_v56  ;;  %1945 = vmatprep.subr.bf16.mxu1 %v2949_v44  ;;  %v274_v56 = vld [vmem:[#allocation5 + $0x538] sm:$0xff]  ;;  %v3002_v44 = vcombine.low %v261_v32, %v265_v33  ;;  %v3011_v46 = vcombine.high %v269_v41, %v273_v42  ;;  %v3059_v32 = vcombine.high %v317_v26, %v321_v27 }
 0x123   :  { %v3013_v47 = vcombine.high %v270_v43, %v274_v56  ;;  %v3012_v53 = vcombine.low %v270_v43, %v274_v56  ;;  %v337_v43 = vld [vmem:[#allocation5 + $0x730] sm:$0xff]  ;;  %v334_v56 = vld [vmem:[#allocation5 + $0x718] sm:$0xff] }
 0x125   :  { %1860 = vmatpush1.bf16.msra.mxu0 %v2946_v49  ;;  %1946 = vmatpush1.bf16.msra.mxu1 %v2948_v50  ;;  %v281_v49 = vld [vmem:[#allocation5 + $0x570] sm:$0xff]  ;;  %v278_v50 = vld [vmem:[#allocation5 + $0x558] sm:$0xff] }
 0x126   :  { %1861 = vmatprep.subr.bf16.mxu0 %v2955_v51  ;;  %1947 = vmatprep.subr.bf16.mxu1 %v2957_v52  ;;  %v282_v51 = vld [vmem:[#allocation5 + $0x578] sm:$0xff]  ;;  %v3010_v52 = vcombine.low %v269_v41, %v273_v42  ;;  %v3019_v54 = vcombine.high %v277_v48, %v281_v49  ;;  %v333_v42 = vld [vmem:[#allocation5 + $0x710] sm:$0xff] }
 0x127   :  { %v3021_v55 = vcombine.high %v278_v50, %v282_v51  ;;  %v3020_v62 = vcombine.low %v278_v50, %v282_v51  ;;  %v345_v50 = vld [vmem:[#allocation5 + $0x770] sm:$0xff]  ;;  %v342_v51 = vld [vmem:[#allocation5 + $0x758] sm:$0xff] }
 0x129   :  { %1862 = vmatpush1.bf16.msra.mxu0 %v2954_v58  ;;  %1948 = vmatpush1.bf16.msra.mxu1 %v2956_v59  ;;  %v289_v58 = vld [vmem:[#allocation5 + $0x5b0] sm:$0xff]  ;;  %v286_v59 = vld [vmem:[#allocation5 + $0x598] sm:$0xff] }
 0x12a   :  { %1863 = vmatprep.subr.bf16.mxu0 %v2963_v60  ;;  %1949 = vmatprep.subr.bf16.mxu1 %v2965_v61  ;;  %v290_v60 = vld [vmem:[#allocation5 + $0x5b8] sm:$0xff]  ;;  %v3018_v61 = vcombine.low %v277_v48, %v281_v49  ;;  %v3027_v63 = vcombine.high %v285_v57, %v289_v58  ;;  %v341_v49 = vld [vmem:[#allocation5 + $0x750] sm:$0xff] }
 0x12b   :  { %v3029_v0 = vcombine.high %v286_v59, %v290_v60  ;;  %v3028_v6 = vcombine.low %v286_v59, %v290_v60  ;;  %v353_v59 = vld [vmem:[#allocation5 + $0x7b0] sm:$0xff]  ;;  %v350_v60 = vld [vmem:[#allocation5 + $0x798] sm:$0xff] }
 0x12d   :  { %1864 = vmatpush1.bf16.msra.mxu0 %v2962_v2  ;;  %1950 = vmatpush1.bf16.msra.mxu1 %v2964_v3  ;;  %v297_v2 = vld [vmem:[#allocation5 + $0x5f0] sm:$0xff]  ;;  %v294_v3 = vld [vmem:[#allocation5 + $0x5d8] sm:$0xff] }
 0x12e   :  { %1865 = vmatprep.subr.bf16.mxu0 %v2971_v4  ;;  %1951 = vmatprep.subr.bf16.mxu1 %v2973_v5  ;;  %v298_v4 = vld [vmem:[#allocation5 + $0x5f8] sm:$0xff]  ;;  %v3026_v5 = vcombine.low %v285_v57, %v289_v58  ;;  %v3035_v7 = vcombine.high %v293_v1, %v297_v2  ;;  %v349_v58 = vld [vmem:[#allocation5 + $0x790] sm:$0xff] }
 0x12f   :  { %v3037_v8 = vcombine.high %v294_v3, %v298_v4  ;;  %v3036_v15 = vcombine.low %v294_v3, %v298_v4  ;;  %v361_v3 = vld [vmem:[#allocation5 + $0x7f0] sm:$0xff]  ;;  %v358_v4 = vld [vmem:[#allocation5 + $0x7d8] sm:$0xff] }
 0x131   :  { %1866 = vmatpush1.bf16.msra.mxu0 %v2970_v11  ;;  %1952 = vmatpush1.bf16.msra.mxu1 %v2972_v12  ;;  %v305_v11 = vld [vmem:[#allocation5 + $0x630] sm:$0xff]  ;;  %v302_v12 = vld [vmem:[#allocation5 + $0x618] sm:$0xff] }
 0x132   :  { %1878 = vmatprep.subr.bf16.mxu0 %v2979_v13  ;;  %1964 = vmatprep.subr.bf16.mxu1 %v2981_v14  ;;  %v306_v13 = vld [vmem:[#allocation5 + $0x638] sm:$0xff]  ;;  %v3034_v14 = vcombine.low %v293_v1, %v297_v2  ;;  %v3043_v16 = vcombine.high %v301_v9, %v305_v11  ;;  %v357_v2 = vld [vmem:[#allocation5 + $0x7d0] sm:$0xff] }
 0x133   :  { %v3045_v17 = vcombine.high %v302_v12, %v306_v13  ;;  %v3044_v23 = vcombine.low %v302_v12, %v306_v13  ;;  %v3332_v13 = vld [vmem:[#allocation7 + $0x40] sm:$0xff]  }
 0x134   :  { %1868 = vmatmul.mubr.bf16.vlgmr.msra.gmra.mrb[4].mxu0 %v3422_v25  ;;  %1954 = vmatmul.mubr.bf16.vlgmr.msra.gmra.mrb[4].mxu1 %v3422_v25 }
 0x135   :  { %1879 = vmatpush1.bf16.msra.mxu0 %v2978_v19  ;;  %1965 = vmatpush1.bf16.msra.mxu1 %v2980_v20  ;;  %v313_v19 = vld [vmem:[#allocation5 + $0x670] sm:$0xff]  ;;  %v310_v20 = vld [vmem:[#allocation5 + $0x658] sm:$0xff] }
 0x136   :  { %1880 = vmatprep.subr.bf16.mxu0 %v2987_v21  ;;  %1966 = vmatprep.subr.bf16.mxu1 %v2989_v22  ;;  %v314_v21 = vld [vmem:[#allocation5 + $0x678] sm:$0xff]  ;;  %v3042_v22 = vcombine.low %v301_v9, %v305_v11  ;;  %v3051_v24 = vcombine.high %v309_v18, %v313_v19  ;;  %v3098_v11 = vcombine.low %v357_v2, %v361_v3 }
 0x137   :  { %1910 = vmatprep.mubr.bf16.mxu0 %v3423_v34  ;;  %1996 = vmatprep.mubr.bf16.mxu1 %v3423_v34  ;;  %v3053_v25 = vcombine.high %v310_v20, %v314_v21  ;;  %v325_v34 = vld [vmem:[#allocation5 + $0x6d0] sm:$0xff] }
 0x139   :  { %1881 = vmatpush1.bf16.msra.mxu0 %v2986_v28  ;;  %1967 = vmatpush1.bf16.msra.mxu1 %v2988_v29  ;;  %v318_v28 = vld [vmem:[#allocation5 + $0x698] sm:$0xff] }
 0x13a   :  { %1882 = vmatprep.subr.bf16.mxu0 %v2995_v30  ;;  %1968 = vmatprep.subr.bf16.mxu1 %v2997_v31  ;;  %v322_v29 = vld [vmem:[#allocation5 + $0x6b8] sm:$0xff]  ;;  %v3050_v30 = vcombine.low %v309_v18, %v313_v19  ;;  %v3052_v31 = vcombine.low %v310_v20, %v314_v21  ;;  %v3337_v18 = vld [vmem:[#allocation7 + $0xc8] sm:$0xff]   ;;  %v3340_v21 = vld [vmem:[#allocation7 + $0x50] sm:$0xff]  }
 0x13b   :  { %v3061_v33 = vcombine.high %v318_v28, %v322_v29  ;;  %v3338_v19 = vld [vmem:[#allocation7 + $0x8] sm:$0xff]  }
 0x13c   :  { %v3339_v20 = vld [vmem:[#allocation7 + $0x88] sm:$0xff]  }
 0x13d   :  { %1883 = vmatpush1.bf16.msra.mxu0 %v2994_v37  ;;  %1969 = vmatpush1.bf16.msra.mxu1 %v2996_v38  ;;  %v330_v37 = vld [vmem:[#allocation5 + $0x6f8] sm:$0xff]  ;;  %v3058_v38 = vcombine.low %v317_v26, %v321_v27 }
 0x13e   :  { %1884 = vmatprep.subr.bf16.mxu0 %v3003_v39  ;;  %1970 = vmatprep.subr.bf16.mxu1 %v3005_v40  ;;  %v3060_v39 = vcombine.low %v318_v28, %v322_v29  ;;  %v3067_v40 = vcombine.high %v325_v34, %v329_v35  ;;  %v3069_v41 = vcombine.high %v326_v36, %v330_v37  ;;  %v3345_v26 = vld [vmem:[#allocation7 + $0xd8] sm:$0xff]   ;;  %v3348_v28 = vld [vmem:[#allocation7 + $0x60] sm:$0xff]  }
 0x13f   :  { %v3346_v27 = vld [vmem:[#allocation7 + $0x18] sm:$0xff]   ;;  %v3349_v29 = vld [vmem:[#allocation7 + $0xe0] sm:$0xff]  }
 0x141   :  { %1885 = vmatpush1.bf16.msra.mxu0 %v3002_v44  ;;  %1971 = vmatpush1.bf16.msra.mxu1 %v3004_v45  ;;  %v338_v44 = vld [vmem:[#allocation5 + $0x738] sm:$0xff]  ;;  %v3066_v45 = vcombine.low %v325_v34, %v329_v35  ;;  %v3354_v34 = vld [vmem:[#allocation7 + $0x28] sm:$0xff]  }
 0x142   :  { %1886 = vmatprep.subr.bf16.mxu0 %v3011_v46  ;;  %1972 = vmatprep.subr.bf16.mxu1 %v3013_v47  ;;  %v3068_v46 = vcombine.low %v326_v36, %v330_v37  ;;  %v3075_v47 = vcombine.high %v333_v42, %v337_v43  ;;  %v3077_v48 = vcombine.high %v334_v56, %v338_v44  ;;  %v3355_v35 = vld [vmem:[#allocation7 + $0xa8] sm:$0xff]   ;;  %v3356_v36 = vld [vmem:[#allocation7 + $0x70] sm:$0xff]  }
 0x143   :  { %v3357_v37 = vld [vmem:[#allocation7 + $0xf0] sm:$0xff]  }
 0x145   :  { %1887 = vmatpush1.bf16.msra.mxu0 %v3010_v52  ;;  %1973 = vmatpush1.bf16.msra.mxu1 %v3012_v53  ;;  %v346_v52 = vld [vmem:[#allocation5 + $0x778] sm:$0xff]  ;;  %v3074_v53 = vcombine.low %v333_v42, %v337_v43 }
 0x146   :  { %1888 = vmatprep.subr.bf16.mxu0 %v3019_v54  ;;  %1974 = vmatprep.subr.bf16.mxu1 %v3021_v55  ;;  %v3076_v54 = vcombine.low %v334_v56, %v338_v44  ;;  %v3083_v55 = vcombine.high %v341_v49, %v345_v50  ;;  %v3085_v57 = vcombine.high %v342_v51, %v346_v52  ;;  %v3362_v42 = vld [vmem:[#allocation7 + $0x38] sm:$0xff]   ;;  %v3364_v56 = vld [vmem:[#allocation7 + $0x140] sm:$0xff]  }
 0x147   :  { %v3363_v43 = vld [vmem:[#allocation7 + $0xb8] sm:$0xff]   ;;  %v3365_v44 = vld [vmem:[#allocation7 + $0x1c0] sm:$0xff]  }
 0x149   :  { %1889 = vmatpush1.bf16.msra.mxu0 %v3018_v61  ;;  %1975 = vmatpush1.bf16.msra.mxu1 %v3020_v62  ;;  %v354_v61 = vld [vmem:[#allocation5 + $0x7b8] sm:$0xff]  ;;  %v3082_v62 = vcombine.low %v341_v49, %v345_v50 }
 0x14a   :  { %1890 = vmatprep.subr.bf16.mxu0 %v3027_v63  ;;  %1976 = vmatprep.subr.bf16.mxu1 %v3029_v0  ;;  %v3084_v63 = vcombine.low %v342_v51, %v346_v52  ;;  %v3091_v0 = vcombine.high %v349_v58, %v353_v59  ;;  %v3093_v1 = vcombine.high %v350_v60, %v354_v61 }
 0x14d   :  { %1891 = vmatpush1.bf16.msra.mxu0 %v3026_v5  ;;  %1977 = vmatpush1.bf16.msra.mxu1 %v3028_v6  ;;  %v362_v5 = vld [vmem:[#allocation5 + $0x7f8] sm:$0xff]  ;;  %v3090_v6 = vcombine.low %v349_v58, %v353_v59  ;;  %v3366_v59 = vld [vmem:[#allocation7 + $0x100] sm:$0xff]  }
 0x14e   :  { %1892 = vmatprep.subr.bf16.mxu0 %v3035_v7  ;;  %1978 = vmatprep.subr.bf16.mxu1 %v3037_v8  ;;  %v3092_v7 = vcombine.low %v350_v60, %v354_v61  ;;  %v3099_v8 = vcombine.high %v357_v2, %v361_v3  ;;  %v3101_v9 = vcombine.high %v358_v4, %v362_v5  ;;  %v3367_v61 = vld [vmem:[#allocation7 + $0x180] sm:$0xff]   ;;  %v3370_v2 = vld [vmem:[#allocation7 + $0x108] sm:$0xff]  }
 0x14f   :  { %v3100_v12 = vcombine.low %v358_v4, %v362_v5  ;;  %v3371_v3 = vld [vmem:[#allocation7 + $0x188] sm:$0xff]   ;;  %v3372_v4 = vld [vmem:[#allocation7 + $0x150] sm:$0xff]  }
 0x150   :  { %v3373_v5 = vld [vmem:[#allocation7 + $0x1d0] sm:$0xff]  }
 0x151   :  { %1893 = vmatpush1.bf16.msra.mxu0 %v3034_v14  ;;  %1979 = vmatpush1.bf16.msra.mxu1 %v3036_v15  ;;  %v3333_v14 = vld [vmem:[#allocation7 + $0xc0] sm:$0xff]  }
 0x152   :  { %1894 = vmatprep.subr.bf16.mxu0 %v3043_v16  ;;  %1980 = vmatprep.subr.bf16.mxu1 %v3045_v17  ;;  %v3334_v15 = vld [vmem:[#allocation7] sm:$0xff]   ;;  %v3336_v17 = vld [vmem:[#allocation7 + $0x48] sm:$0xff]  }
 0x153   :  { %v3335_v16 = vld [vmem:[#allocation7 + $0x80] sm:$0xff]  }
 0x155   :  { %1895 = vmatpush1.bf16.msra.mxu0 %v3042_v22  ;;  %1981 = vmatpush1.bf16.msra.mxu1 %v3044_v23  ;;  %v3341_v22 = vld [vmem:[#allocation7 + $0xd0] sm:$0xff]  }
 0x156   :  { %1896 = vmatprep.subr.bf16.mxu0 %v3051_v24  ;;  %1982 = vmatprep.subr.bf16.mxu1 %v3053_v25  ;;  %v3342_v23 = vld [vmem:[#allocation7 + $0x10] sm:$0xff]   ;;  %v3344_v25 = vld [vmem:[#allocation7 + $0x58] sm:$0xff]  }
 0x157   :  { %v3343_v24 = vld [vmem:[#allocation7 + $0x90] sm:$0xff]  }
 0x159   :  { %1897 = vmatpush1.bf16.msra.mxu0 %v3050_v30  ;;  %1983 = vmatpush1.bf16.msra.mxu1 %v3052_v31  ;;  %v3350_v30 = vld [vmem:[#allocation7 + $0x20] sm:$0xff]  }
 0x15a   :  { %1898 = vmatprep.subr.bf16.mxu0 %v3059_v32  ;;  %1984 = vmatprep.subr.bf16.mxu1 %v3061_v33  ;;  %v3351_v31 = vld [vmem:[#allocation7 + $0xa0] sm:$0xff]   ;;  %v3352_v32 = vld [vmem:[#allocation7 + $0x68] sm:$0xff]  }
 0x15b   :  { %v3353_v33 = vld [vmem:[#allocation7 + $0xe8] sm:$0xff]  }
 0x15d   :  { %1899 = vmatpush1.bf16.msra.mxu0 %v3058_v38  ;;  %1985 = vmatpush1.bf16.msra.mxu1 %v3060_v39  ;;  %v3358_v38 = vld [vmem:[#allocation7 + $0x30] sm:$0xff]  }
 0x15e   :  { %1900 = vmatprep.subr.bf16.mxu0 %v3067_v40  ;;  %1986 = vmatprep.subr.bf16.mxu1 %v3069_v41  ;;  %v3359_v39 = vld [vmem:[#allocation7 + $0xb0] sm:$0xff]   ;;  %v3360_v40 = vld [vmem:[#allocation7 + $0x78] sm:$0xff]  }
 0x15f   :  { %v3361_v41 = vld [vmem:[#allocation7 + $0xf8] sm:$0xff]  }
 0x161   :  { %1901 = vmatpush1.bf16.msra.mxu0 %v3066_v45  ;;  %1987 = vmatpush1.bf16.msra.mxu1 %v3068_v46 }
 0x162   :  { %1902 = vmatprep.subr.bf16.mxu0 %v3075_v47  ;;  %1988 = vmatprep.subr.bf16.mxu1 %v3077_v48 }
 0x165   :  { %1903 = vmatpush1.bf16.msra.mxu0 %v3074_v53  ;;  %1989 = vmatpush1.bf16.msra.mxu1 %v3076_v54 }
 0x166   :  { %1904 = vmatprep.subr.bf16.mxu0 %v3083_v55  ;;  %1990 = vmatprep.subr.bf16.mxu1 %v3085_v57 }
 0x169   :  { %1905 = vmatpush1.bf16.msra.mxu0 %v3082_v62  ;;  %1991 = vmatpush1.bf16.msra.mxu1 %v3084_v63  ;;  %v3368_v62 = vld [vmem:[#allocation7 + $0x148] sm:$0xff]  }
 0x16a   :  { %1906 = vmatprep.subr.bf16.mxu0 %v3091_v0  ;;  %1992 = vmatprep.subr.bf16.mxu1 %v3093_v1  ;;  %v3369_v0 = vld [vmem:[#allocation7 + $0x1c8] sm:$0xff]  }
 0x16d   :  { %1907 = vmatpush1.bf16.msra.mxu0 %v3090_v6  ;;  %1993 = vmatpush1.bf16.msra.mxu1 %v3092_v7  ;;  %v3374_v6 = vld [vmem:[#allocation7 + $0x110] sm:$0xff]  }
 0x16e   :  { %1908 = vmatprep.subr.bf16.mxu0 %v3099_v8  ;;  %1994 = vmatprep.subr.bf16.mxu1 %v3101_v9  ;;  %v3375_v7 = vld [vmem:[#allocation7 + $0x190] sm:$0xff]   ;;  %v3376_v8 = vld [vmem:[#allocation7 + $0x158] sm:$0xff]  }
 0x16f   :  { %v3377_v9 = vld [vmem:[#allocation7 + $0x1d8] sm:$0xff]  }
 0x171   :  { %1909 = vmatpush1.bf16.msra.mxu0 %v3098_v11  ;;  %1995 = vmatpush1.bf16.msra.mxu1 %v3100_v12  ;;  %v3378_v11 = vld [vmem:[#allocation7 + $0x118] sm:$0xff]  }
 0x172   :  { %3176 = vmatprep.subr.bf16.mxu0 %v3332_v13  ;;  %3198 = vmatprep.subr.bf16.mxu1 %v3333_v14  ;;  %v3379_v12 = vld [vmem:[#allocation7 + $0x198] sm:$0xff]   ;;  %v3380_v13 = vld [vmem:[#allocation7 + $0x160] sm:$0xff]  }
 0x173   :  { %v3381_v14 = vld [vmem:[#allocation7 + $0x1e0] sm:$0xff]  }
 0x174   :  { %1911 = vmatmul.mubr.bf16.vlgmr.msra.gmra.mrb[4].mxu0 %v3716_v10  ;;  %1997 = vmatmul.mubr.bf16.vlgmr.msra.gmra.mrb[4].mxu1 %v3716_v10  ;;  %v3347_v10 = vld [vmem:[#allocation7 + $0x98] sm:$0xff]  }
 0x175   :  { %3177 = vmatpush3.bf16.msra.mxu0 %v3334_v15  ;;  %3199 = vmatpush3.bf16.msra.mxu1 %v3335_v16  ;;  %v3382_v15 = vld [vmem:[#allocation7 + $0x120] sm:$0xff]  }
 0x176   :  { %3178 = vmatprep.subr.bf16.mxu0 %v3336_v17  ;;  %3200 = vmatprep.subr.bf16.mxu1 %v3337_v18  ;;  %v3383_v16 = vld [vmem:[#allocation7 + $0x1a0] sm:$0xff]   ;;  %v3384_v17 = vld [vmem:[#allocation7 + $0x168] sm:$0xff]  }
 0x177   :  { %v3385_v18 = vld [vmem:[#allocation7 + $0x1e8] sm:$0xff]  }
 0x179   :  { %3179 = vmatpush3.bf16.msra.mxu0 %v3338_v19  ;;  %3201 = vmatpush3.bf16.msra.mxu1 %v3339_v20  ;;  %v3386_v19 = vld [vmem:[#allocation7 + $0x128] sm:$0xff]  }
 0x17a   :  { %3180 = vmatprep.subr.bf16.mxu0 %v3340_v21  ;;  %3202 = vmatprep.subr.bf16.mxu1 %v3341_v22  ;;  %v3387_v20 = vld [vmem:[#allocation7 + $0x1a8] sm:$0xff]   ;;  %v3388_v21 = vld [vmem:[#allocation7 + $0x170] sm:$0xff]  }
 0x17b   :  { %v3389_v22 = vld [vmem:[#allocation7 + $0x1f0] sm:$0xff]  }
 0x17d   :  { %3181 = vmatpush3.bf16.msra.mxu0 %v3342_v23  ;;  %3203 = vmatpush3.bf16.msra.mxu1 %v3343_v24  ;;  %v3390_v23 = vld [vmem:[#allocation7 + $0x130] sm:$0xff]  }
 0x17e   :  { %3182 = vmatprep.subr.bf16.mxu0 %v3344_v25  ;;  %3204 = vmatprep.subr.bf16.mxu1 %v3345_v26  ;;  %v3391_v24 = vld [vmem:[#allocation7 + $0x1b0] sm:$0xff]   ;;  %v3392_v25 = vld [vmem:[#allocation7 + $0x178] sm:$0xff]  }
 0x17f   :  { %v3393_v26 = vld [vmem:[#allocation7 + $0x1f8] sm:$0xff]  }
 0x181   :  { %3183 = vmatpush3.bf16.msra.mxu0 %v3346_v27  ;;  %3205 = vmatpush3.bf16.msra.mxu1 %v3347_v10  ;;  %v3394_v27 = vld [vmem:[#allocation7 + $0x138] sm:$0xff]  }
 0x182   :  { %3184 = vmatprep.subr.bf16.mxu0 %v3348_v28  ;;  %3206 = vmatprep.subr.bf16.mxu1 %v3349_v29  ;;  %v3395_v10 = vld [vmem:[#allocation7 + $0x1b8] sm:$0xff]   ;;  %v3600_v28 = vmov 0.0  }
 0x185   :  { %3185 = vmatpush3.bf16.msra.mxu0 %v3350_v30  ;;  %3207 = vmatpush3.bf16.msra.mxu1 %v3351_v31 }
 0x186   :  { %3186 = vmatprep.subr.bf16.mxu0 %v3352_v32  ;;  %3208 = vmatprep.subr.bf16.mxu1 %v3353_v33 }
 0x189   :  { %3187 = vmatpush3.bf16.msra.mxu0 %v3354_v34  ;;  %3209 = vmatpush3.bf16.msra.mxu1 %v3355_v35 }
 0x18a   :  { %3188 = vmatprep.subr.bf16.mxu0 %v3356_v36  ;;  %3210 = vmatprep.subr.bf16.mxu1 %v3357_v37 }
 0x18d   :  { %3189 = vmatpush3.bf16.msra.mxu0 %v3358_v38  ;;  %3211 = vmatpush3.bf16.msra.mxu1 %v3359_v39 }
 0x18e   :  { %3190 = vmatprep.subr.bf16.mxu0 %v3360_v40  ;;  %3212 = vmatprep.subr.bf16.mxu1 %v3361_v41 }
 0x191   :  { %3191 = vmatpush3.bf16.msra.mxu0 %v3362_v42  ;;  %3213 = vmatpush3.bf16.msra.mxu1 %v3363_v43  ;;  %v3396_v42 = vld [vmem:[#allocation10] sm:$0xff]  }
 0x192   :  { %3220 = vmatprep.subr.bf16.mxu0 %v3364_v56  ;;  %3242 = vmatprep.subr.bf16.mxu1 %v3365_v44 }
 0x1c7   :  { %v1740_v45 = vpop.f32.mrb[0].mxu0  ;;  %v1826_v46 = vpop.f32.mrb[0].mxu1 }
 0x1c8   :  { %v1742_v47 = vpop.f32.mrb[1].mxu0  ;;  %v1828_v48 = vpop.f32.mrb[1].mxu1 }
 0x1c9   :  { %v1744_v49 = vpop.f32.mrb[2].mxu0  ;;  %v1830_v51 = vpop.f32.mrb[2].mxu1 }
 0x1ca   :  { %v2007_v50 = vpack.c.bf16 %v1744_v49, %v1740_v45  ;;  %v1746_v52 = vpop.f32.mrb[3].mxu0  ;;  %v2009_v53 = vpack.c.bf16 %v1830_v51, %v1826_v46  ;;  %v1832_v55 = vpop.f32.mrb[3].mxu1  ;;  %v3397_v45 = vld [vmem:[#allocation10 + $0x8] sm:$0xff]   ;;  %v3102_v49 = vld [vmem:[#allocation8] ss:$0 sm:$0xff] }
 0x1cb   :  { %v2008_v54 = vpack.c.bf16 %v1746_v52, %v1742_v47  ;;  %v2010_v57 = vpack.c.bf16 %v1832_v55, %v1828_v48  ;;  %v3398_v47 = vld [vmem:[#allocation10 + $0x10] sm:$0xff]  }
 0x1cc   :  { %3404 = vtanh.bf16 %v2007_v50 }
 0x1cd   :  { %3406 = vtanh.bf16 %v2008_v54 }
 0x1ce   :  { %3408 = vtanh.bf16 %v2010_v57 }
 0x1cf   :  { %3410 = vtanh.bf16 %v2009_v53 }
 0x1d7   :  { %v3405_v58 = vpop.eup %3404 }
 0x1d8   :  { %v3407_v60 = vpop.eup %3406 }
 0x1d9   :  { %v3409_v63 = vpop.eup %3408  ;;  %2574 = vmatprep.mubr.bf16.mxu0 %v3407_v60 }
 0x1da   :  { %v3411_v1 = vpop.eup %3410  ;;  %2615 = vmatprep.mubr.bf16.mxu1 %v3409_v63  ;;  %2575 = vmatmul.mubr.bf16.vlgmr.msra.gmra.mrb[8].mxu0 %v3405_v58 }
 0x1db   :  { %2616 = vmatmul.mubr.bf16.vlgmr.msra.gmra.mrb[8].mxu1 %v3411_v1  ;;  %3221 = vmatpush3.bf16.msra.mxu0 %v3366_v59 }
 0x1dc   :  { %3243 = vmatpush3.bf16.msra.mxu1 %v3367_v61  ;;  %3222 = vmatprep.subr.bf16.mxu0 %v3368_v62  ;;  %v3399_v61 = vld [vmem:[#allocation10 + $0x18] sm:$0xff]  }
 0x1dd   :  { %3244 = vmatprep.subr.bf16.mxu1 %v3369_v0 }
 0x1df   :  { %3223 = vmatpush3.bf16.msra.mxu0 %v3370_v2  ;;  %v3400_v2 = vld [vmem:[#allocation10 + $0x20] sm:$0xff]  }
 0x1e0   :  { %3245 = vmatpush3.bf16.msra.mxu1 %v3371_v3  ;;  %3224 = vmatprep.subr.bf16.mxu0 %v3372_v4  ;;  %v3401_v3 = vld [vmem:[#allocation10 + $0x28] sm:$0xff]   ;;  %v3402_v4 = vld [vmem:[#allocation10 + $0x30] sm:$0xff]  }
 0x1e1   :  { %3246 = vmatprep.subr.bf16.mxu1 %v3373_v5  ;;  %v3403_v5 = vld [vmem:[#allocation10 + $0x38] sm:$0xff]  }
 0x1e3   :  { %3225 = vmatpush3.bf16.msra.mxu0 %v3374_v6 }
 0x1e4   :  { %3247 = vmatpush3.bf16.msra.mxu1 %v3375_v7  ;;  %3226 = vmatprep.subr.bf16.mxu0 %v3376_v8 }
 0x1e5   :  { %3248 = vmatprep.subr.bf16.mxu1 %v3377_v9 }
 0x1e7   :  { %3227 = vmatpush3.bf16.msra.mxu0 %v3378_v11 }
 0x1e8   :  { %3249 = vmatpush3.bf16.msra.mxu1 %v3379_v12  ;;  %3228 = vmatprep.subr.bf16.mxu0 %v3380_v13 }
 0x1e9   :  { %3250 = vmatprep.subr.bf16.mxu1 %v3381_v14 }
 0x1eb   :  { %3229 = vmatpush3.bf16.msra.mxu0 %v3382_v15 }
 0x1ec   :  { %3251 = vmatpush3.bf16.msra.mxu1 %v3383_v16  ;;  %3230 = vmatprep.subr.bf16.mxu0 %v3384_v17 }
 0x1ed   :  { %3252 = vmatprep.subr.bf16.mxu1 %v3385_v18 }
 0x1ef   :  { %3231 = vmatpush3.bf16.msra.mxu0 %v3386_v19 }
 0x1f0   :  { %3253 = vmatpush3.bf16.msra.mxu1 %v3387_v20  ;;  %3232 = vmatprep.subr.bf16.mxu0 %v3388_v21 }
 0x1f1   :  { %3254 = vmatprep.subr.bf16.mxu1 %v3389_v22 }
 0x1f3   :  { %3233 = vmatpush3.bf16.msra.mxu0 %v3390_v23 }
 0x1f4   :  { %3255 = vmatpush3.bf16.msra.mxu1 %v3391_v24  ;;  %3234 = vmatprep.subr.bf16.mxu0 %v3392_v25  ;;  %v3167_v25 = vld [vmem:[#allocation11] ss:$0 sm:$0xff] }
 0x1f5   :  { %3256 = vmatprep.subr.bf16.mxu1 %v3393_v26 }
 0x1f7   :  { %3235 = vmatpush3.bf16.msra.mxu0 %v3394_v27 }
 0x1f8   :  { %3257 = vmatpush3.bf16.msra.mxu1 %v3395_v10  ;;  %3273 = vmatprep.subr.bf16.mxu0 %v3600_v28 }
 0x247   :  { %v1912_v29 = vpop.f32.mrb[4].mxu0  ;;  %v1998_v30 = vpop.f32.mrb[4].mxu1 }
 0x248   :  { %v1914_v31 = vpop.f32.mrb[5].mxu0  ;;  %v2000_v32 = vpop.f32.mrb[5].mxu1 }
 0x249   :  { %v1916_v33 = vpop.f32.mrb[6].mxu0  ;;  %v2002_v35 = vpop.f32.mrb[6].mxu1 }
 0x24a   :  { %v2011_v34 = vpack.c.bf16 %v1916_v33, %v1912_v29  ;;  %v1918_v36 = vpop.f32.mrb[7].mxu0  ;;  %v2013_v37 = vpack.c.bf16 %v2002_v35, %v1998_v30  ;;  %v2004_v39 = vpop.f32.mrb[7].mxu1 }
 0x24b   :  { %v2012_v38 = vpack.c.bf16 %v1918_v36, %v1914_v31  ;;  %v2014_v40 = vpack.c.bf16 %v2004_v39, %v2000_v32 }
 0x24c   :  { %3412 = vtanh.bf16 %v2011_v34 }
 0x24d   :  { %3414 = vtanh.bf16 %v2012_v38 }
 0x24e   :  { %3416 = vtanh.bf16 %v2014_v40 }
 0x24f   :  { %3418 = vtanh.bf16 %v2013_v37 }
 0x257   :  { %v3413_v41 = vpop.eup %3412 }
 0x258   :  { %v3415_v43 = vpop.eup %3414 }
 0x259   :  { %v3417_v56 = vpop.eup %3416  ;;  %2656 = vmatprep.mubr.bf16.mxu0 %v3415_v43 }
 0x25a   :  { %v3419_v44 = vpop.eup %3418  ;;  %2697 = vmatprep.mubr.bf16.mxu1 %v3417_v56  ;;  %2657 = vmatmul.mubr.bf16.vlgmr.msra.gmra.mrb[12].mxu0 %v3413_v41 }
 0x25b   :  { %2698 = vmatmul.mubr.bf16.vlgmr.msra.gmra.mrb[12].mxu1 %v3419_v44  ;;  %3274 = vmatpush3.bf16.msra.mxu0 %v3396_v42 }
 0x25c   :  { %3275 = vmatprep.subr.bf16.mxu0 %v3600_v28  ;;  %3289 = vmatprep.mubr.msk.bf16.mxu0 %vm3601_vm0, %v3600_v28 }
 0x25f   :  { %3276 = vmatpush3.bf16.msra.mxu0 %v3397_v45 }
 0x260   :  { %3277 = vmatprep.subr.bf16.mxu0 %v3600_v28 }
 0x263   :  { %3278 = vmatpush3.bf16.msra.mxu0 %v3398_v47 }
 0x264   :  { %3279 = vmatprep.subr.bf16.mxu0 %v3600_v28 }
 0x267   :  { %3280 = vmatpush3.bf16.msra.mxu0 %v3399_v61 }
 0x268   :  { %3281 = vmatprep.subr.bf16.mxu0 %v3600_v28 }
 0x26b   :  { %3282 = vmatpush3.bf16.msra.mxu0 %v3400_v2 }
 0x26c   :  { %3283 = vmatprep.subr.bf16.mxu0 %v3600_v28 }
 0x26f   :  { %3284 = vmatpush3.bf16.msra.mxu0 %v3401_v3 }
 0x270   :  { %3285 = vmatprep.subr.bf16.mxu0 %v3600_v28 }
 0x273   :  { %3286 = vmatpush3.bf16.msra.mxu0 %v3402_v4 }
 0x274   :  { %3287 = vmatprep.subr.bf16.mxu0 %v3600_v28 }
 0x277   :  { %3288 = vmatpush3.bf16.msra.mxu0 %v3403_v5 }
 0x2ad   :  { %v3192_v46 = vpop.f32.mrb[8].mxu0 }
 0x2ae   :  { %v3214_v48 = vpop.f32.mrb[8].mxu1  ;;  %v3193_v50 = vpop.f32.mrb[9].mxu0 }
 0x2af   :  { %v3194_v51 = vadd.f32 %v3193_v50, %v3192_v46  ;;  %v3215_v52 = vpop.f32.mrb[9].mxu1  ;;  %v3195_v53 = vpop.f32.mrb[10].mxu0 }
 0x2b0   :  { %v3216_v54 = vadd.f32 %v3215_v52, %v3214_v48  ;;  %v3217_v55 = vpop.f32.mrb[10].mxu1  ;;  %v3196_v57 = vpop.f32.mrb[11].mxu0 }
 0x2b1   :  { %v2577_v58 = vadd.f32 %v3194_v51, %v3102_v49  ;;  %v3197_v59 = vadd.f32 %v3196_v57, %v3195_v53  ;;  %v3218_v60 = vpop.f32.mrb[11].mxu1 }
 0x2b2   :  { %v3219_v62 = vadd.f32 %v3218_v60, %v3217_v55 }
 0x2b3   :  { %v2618_v63 = vadd.f32 %v3216_v54, %v2577_v58  ;;  %v2580_v0 = vadd.f32 %v3197_v59, %v3102_v49 }
 0x2b5   :  { %v2621_v1 = vadd.f32 %v3219_v62, %v2580_v0 }
 0x32d   :  { %v3236_v6 = vpop.f32.mrb[12].mxu0 }
 0x32e   :  { %v3258_v7 = vpop.f32.mrb[12].mxu1  ;;  %v3237_v8 = vpop.f32.mrb[13].mxu0 }
 0x32f   :  { %v3238_v9 = vadd.f32 %v3237_v8, %v3236_v6  ;;  %v3259_v11 = vpop.f32.mrb[13].mxu1  ;;  %v3239_v12 = vpop.f32.mrb[14].mxu0 }
 0x330   :  { %v3260_v13 = vadd.f32 %v3259_v11, %v3258_v7  ;;  %v3261_v14 = vpop.f32.mrb[14].mxu1  ;;  %v3240_v15 = vpop.f32.mrb[15].mxu0 }
 0x331   :  { %v2659_v16 = vadd.f32 %v3238_v9, %v2618_v63  ;;  %v3241_v17 = vadd.f32 %v3240_v15, %v3239_v12  ;;  %v3262_v18 = vpop.f32.mrb[15].mxu1 }
 0x332   :  { %v3263_v19 = vadd.f32 %v3262_v18, %v3261_v14 }
 0x333   :  { %v2700_v20 = vadd.f32 %v3260_v13, %v2659_v16  ;;  %v2662_v21 = vadd.f32 %v3241_v17, %v2621_v1 }
 0x335   :  { %v2703_v22 = vadd.f32 %v3263_v19, %v2662_v21 }
 0x337   :  { %v2706_v23 = vpack.c.bf16 %v2703_v22, %v2700_v20 }
 0x339   :  { %3420 = vtanh.bf16 %v2706_v23 }
 0x344   :  { %v3421_v24 = vpop.eup %3420 }
 0x345   :  { %3290 = vmatmul.mubr.bf16.vlgmr.msra.gmra.mrb[16].mxu0 %v3421_v24 }
 0x418   :  { %v2813_v26 = vpop.f32.mrb[16].mxu0 }
 0x419   :  { %v2814_v27 = vadd.f32 %v3167_v25, %v2813_v26  ;;  %v3291_v10 = vpop.f32.mrb[17].mxu0 }
 0x41a   :  { %v2816_v28 = vpop.f32.mrb[18].mxu0 }
 0x41b   :  { %2820 = vst [vmem:[#allocation13] sm:$0xff] %v2814_v27  ;;  %v2817_v29 = vadd.f32 %v3167_v25, %v2816_v28  ;;  %v3292_v30 = vpop.f32.mrb[19].mxu0 }
 0x41d   :  { %2821 = vst [vmem:[#allocation13 + $0x8] sm:$0xff] %v2817_v29 }
 0x41e   :  { %3567 = shalt.err (!%p3564_p10)
}
 0x41f   :  { %s3568_s24 = scalar_lea.hbm %s3751_s6, 256 }
 0x420   :  { %p3569_p11 = scmp.ne.s32.totalorder %s3751_s6, %s3568_s24  ;;  %p3572_p12 = scmp.lt.u32.totalorder %s3568_s24, %s3751_s6 }
 0x422   :  { %p3574_p13 = pnand %p3572_p12, %p3569_p11 }
 0x424   :  { %3577 = shalt.err (!%p3574_p13)
}
 0x425   :  { %s3603_s29 = smov 128   ;;  %s3604_s30 = smov 8  }
 0x426   :  { %2833 = dma.vmem_to_hbm [thread:$0]  %s2828_s0, 256, %s3751_s6, [#allocation4], %s3603_s29, %s3603_s29, %s3604_s30  }
 0x427   :  { %3586 = dma.done.wait [#allocation4], 256  }
 0x428   :  { %3587 = vsyncadd [#allocation4], 4294967040 }
 0x429   :  { %2837 = vsyncpa [#allocation3], 1 }
 0x42a   :  { %2838 = vsyncpa [#allocation6], 1 }
 0x42b   :  { %2839 = vsyncpa [#allocation9], 1 }
 0x42c   :  { %2840 = vsyncpa [#allocation12], 1 }
 0x42d   :  { %2841 = vsyncpa [#allocation4], 1 }

</bundles_post_ra>
